<compile_context>
chip_gen: v5e
topology: v5e:2x2
jax: 0.10.0
libtpu: 0.0.40
codegen_flags: <defaults>
</compile_context>

<pallas_src>
import functools

import jax
import jax.numpy as jnp
from jax import lax
from jax.experimental import pallas as pl
from jax.experimental.pallas import tpu as pltpu

INPUT_SIZE = 2
HIDDEN_SIZE = 4
OUTPUT_SIZE = 1
NUM_LAYERS = 2


def _lstm_kernel(S, B, x_ref, wih0_ref, whh0_ref, b0_ref,
                 wcat1_ref, b1_ref, wout_ref, bout_ref,
                 out_ref, h1_buf):
    H = whh0_ref.shape[0]

    x = x_ref[...]            # (S*B, I)  time-major, flattened in the wrapper
    wih0 = wih0_ref[...]      # (I, 4H)
    whh0 = whh0_ref[...]      # (H, 4H)
    b0 = b0_ref[...]          # (1, 4H)   (= bias_ih0 + bias_hh0)
    wcat1 = wcat1_ref[...]    # (2H, 4H)  rows [0:H]=W_ih1 (acts on h0), [H:2H]=W_hh1 (acts on h1)
    b1 = b1_ref[...]          # (1, 4H)   (= bias_ih1 + bias_hh1)
    wout = wout_ref[...]      # (H, O)
    bout = bout_ref[...]      # (1, O)

    # Hoisted: layer-0 input-to-hidden projection for every timestep at once,
    # bias folded in.  Removes one dependent dot from every serial step.
    pre0 = jnp.dot(x, wih0, preferred_element_type=jnp.float32) + b0   # (S*B, 4H)

    def gates_to_hc(gates, c):
        # Two full-vreg EUP passes instead of four sub-slice ones.
        sg = jax.nn.sigmoid(gates)               # covers i, f, o
        tg = jnp.tanh(gates)                     # covers g
        i = sg[:, 0 * H:1 * H]
        f = sg[:, 1 * H:2 * H]
        g = tg[:, 2 * H:3 * H]
        o = sg[:, 3 * H:4 * H]
        c_new = f * c + i * g
        h_new = o * jnp.tanh(c_new)
        return h_new, c_new

    zeros = jnp.zeros((B, H), jnp.float32)
    h0, c0, h1, c1 = zeros, zeros, zeros, zeros

    # S is static at trace time -> fully unrolled recurrence.
    for t in range(S):
        # Layer 0: only the recurrent dot remains on the per-step chain.
        g0 = pre0[t * B:(t + 1) * B, :] + jnp.dot(
            h0, whh0, preferred_element_type=jnp.float32)
        h0, c0 = gates_to_hc(g0, c0)

        # Layer 1: single fused dot  [h0 | h1] @ [W_ih1 ; W_hh1].
        xin1 = jnp.concatenate([h0, h1], axis=-1)                      # (B, 2H)
        g1 = jnp.dot(xin1, wcat1, preferred_element_type=jnp.float32) + b1
        h1, c1 = gates_to_hc(g1, c1)

        # Side store (not on the recurrence's dependency chain).
        h1_buf[t * B:(t + 1) * B, :] = h1

    # Batched output Linear: one matmul + one store for the whole sequence.
    h1_all = h1_buf[...]                                               # (S*B, H)
    out_ref[...] = jnp.dot(h1_all, wout,
                           preferred_element_type=jnp.float32) + bout  # (S*B, O)


def lstm_forward(x, params):
    """x: (S, B, INPUT_SIZE) float32 -> (S, B, OUTPUT_SIZE) float32."""
    S, B, I = x.shape
    x_flat = x.reshape(S * B, I)                 # wrapper-side reshape: free plumbing
    kernel = functools.partial(_lstm_kernel, S, B)
    out_flat = pl.pallas_call(
        kernel,
        out_shape=jax.ShapeDtypeStruct((S * B, OUTPUT_SIZE), jnp.float32),
        in_specs=[pl.BlockSpec(memory_space=pltpu.MemorySpace.VMEM)] * 8,
        out_specs=pl.BlockSpec(memory_space=pltpu.MemorySpace.VMEM),
        scratch_shapes=[pltpu.VMEM((S * B, HIDDEN_SIZE), jnp.float32)],
    )(x_flat, *params)
    return out_flat.reshape(S, B, OUTPUT_SIZE)


def init_params(key):
    """Deterministic init mimicking PyTorch's U(-1/sqrt(H), 1/sqrt(H)),
    packed for the kernel (transposed weights, fused biases, concatenated layer-1 W)."""
    bound = 1.0 / (HIDDEN_SIZE ** 0.5)
    keys = jax.random.split(key, 10)

    def u(k_, shape):
        return jax.random.uniform(k_, shape, jnp.float32, -bound, bound)

    # PyTorch parameter shapes, then repacked for the kernel.
    wih0 = u(keys[0], (4 * HIDDEN_SIZE, INPUT_SIZE))
    whh0 = u(keys[1], (4 * HIDDEN_SIZE, HIDDEN_SIZE))
    bih0 = u(keys[2], (4 * HIDDEN_SIZE,))
    bhh0 = u(keys[3], (4 * HIDDEN_SIZE,))
    wih1 = u(keys[4], (4 * HIDDEN_SIZE, HIDDEN_SIZE))
    whh1 = u(keys[5], (4 * HIDDEN_SIZE, HIDDEN_SIZE))
    bih1 = u(keys[6], (4 * HIDDEN_SIZE,))
    bhh1 = u(keys[7], (4 * HIDDEN_SIZE,))
    wlin = u(keys[8], (OUTPUT_SIZE, HIDDEN_SIZE))
    blin = u(keys[9], (OUTPUT_SIZE,))

    wcat1 = jnp.concatenate([wih1.T, whh1.T], axis=0)      # (2H, 4H)
    return (wih0.T, whh0.T, (bih0 + bhh0)[None, :],
            wcat1, (bih1 + bhh1)[None, :],
            wlin.T, blin[None, :])


def reference(x, params):
    """Pure-JAX reference (lax.scan) of the same forward pass."""
    wih0, whh0, b0, wcat1, b1, wout, bout = params
    H = HIDDEN_SIZE
    B = x.shape[1]
    wih1 = wcat1[:H]
    whh1 = wcat1[H:]

    def cell(x_t, h, c, wih, whh, b):
        gates = x_t @ wih + h @ whh + b
        i = jax.nn.sigmoid(gates[:, :H])
        f = jax.nn.sigmoid(gates[:, H:2 * H])
        g = jnp.tanh(gates[:, 2 * H:3 * H])
        o = jax.nn.sigmoid(gates[:, 3 * H:])
        c = f * c + i * g
        h = o * jnp.tanh(c)
        return h, c

    def step(carry, x_t):
        h0, c0, h1, c1 = carry
        h0, c0 = cell(x_t, h0, c0, wih0, whh0, b0)
        h1, c1 = cell(h0, h1, c1, wih1, whh1, b1)
        y = h1 @ wout + bout
        return (h0, c0, h1, c1), y

    z = jnp.zeros((B, H), jnp.float32)
    _, ys = lax.scan(step, (z, z, z, z), x)
    return ys


if __name__ == "__main__":
    S, B = 8, 4
    key = jax.random.PRNGKey(0)
    k_x, k_p = jax.random.split(key)
    x = jax.random.normal(k_x, (S, B, INPUT_SIZE), jnp.float32)
    params = init_params(k_p)

    out = lstm_forward(x, params)
    out = jax.block_until_ready(out)

    ref = reference(x, params)
    assert out.shape == (S, B, OUTPUT_SIZE), out.shape
    assert jnp.allclose(out, ref, atol=1e-5, rtol=1e-5), "mismatch vs reference"
    print("KERNEL_OK")
</pallas_src>

<mosaic_0001>
module attributes {stable_mosaic.version = 11 : i64} {
  func.func @_lstm_kernel(%arg0: memref<32x2xf32, #tpu.memory_space<vmem>>, %arg1: memref<2x16xf32, #tpu.memory_space<vmem>>, %arg2: memref<4x16xf32, #tpu.memory_space<vmem>>, %arg3: memref<1x16xf32, #tpu.memory_space<vmem>>, %arg4: memref<8x16xf32, #tpu.memory_space<vmem>>, %arg5: memref<1x16xf32, #tpu.memory_space<vmem>>, %arg6: memref<4x1xf32, #tpu.memory_space<vmem>>, %arg7: memref<1x1xf32, #tpu.memory_space<vmem>>, %arg8: memref<32x1xf32, #tpu.memory_space<vmem>>, %arg9: memref<32x4xf32, #tpu.memory_space<vmem>>) attributes {dimension_semantics = [], scalar_prefetch = 0 : i64, scratch_operands = 1 : i64, tpu.core_type = #tpu.core_type<tc>} {
    %c0 = arith.constant 0 : index
    %c0_0 = arith.constant 0 : index
    %0 = vector.load %arg0[%c0, %c0_0] : memref<32x2xf32, #tpu.memory_space<vmem>>, vector<32x2xf32>
    %c0_1 = arith.constant 0 : index
    %c0_2 = arith.constant 0 : index
    %1 = vector.load %arg1[%c0_1, %c0_2] : memref<2x16xf32, #tpu.memory_space<vmem>>, vector<2x16xf32>
    %c0_3 = arith.constant 0 : index
    %c0_4 = arith.constant 0 : index
    %2 = vector.load %arg2[%c0_3, %c0_4] : memref<4x16xf32, #tpu.memory_space<vmem>>, vector<4x16xf32>
    %c0_5 = arith.constant 0 : index
    %c0_6 = arith.constant 0 : index
    %3 = vector.load %arg3[%c0_5, %c0_6] : memref<1x16xf32, #tpu.memory_space<vmem>>, vector<1x16xf32>
    %c0_7 = arith.constant 0 : index
    %c0_8 = arith.constant 0 : index
    %4 = vector.load %arg4[%c0_7, %c0_8] : memref<8x16xf32, #tpu.memory_space<vmem>>, vector<8x16xf32>
    %c0_9 = arith.constant 0 : index
    %c0_10 = arith.constant 0 : index
    %5 = vector.load %arg5[%c0_9, %c0_10] : memref<1x16xf32, #tpu.memory_space<vmem>>, vector<1x16xf32>
    %c0_11 = arith.constant 0 : index
    %c0_12 = arith.constant 0 : index
    %6 = vector.load %arg6[%c0_11, %c0_12] : memref<4x1xf32, #tpu.memory_space<vmem>>, vector<4x1xf32>
    %c0_13 = arith.constant 0 : index
    %c0_14 = arith.constant 0 : index
    %7 = vector.load %arg7[%c0_13, %c0_14] : memref<1x1xf32, #tpu.memory_space<vmem>>, vector<1x1xf32>
    %cst = arith.constant dense<0.000000e+00> : vector<32x16xf32>
    %8 = tpu.matmul %0, %1, %cst {dimension_numbers = #tpu.dot_dimension_numbers<[1], [0], [0], [1], [0, 0, 1, 1], [], []>} : vector<32x2xf32>, vector<2x16xf32>, vector<32x16xf32> -> vector<32x16xf32>
    %9 = vector.broadcast %3 : vector<1x16xf32> to vector<32x16xf32>
    %10 = arith.addf %8, %9 : vector<32x16xf32>
    %cst_15 = arith.constant 0.000000e+00 : f32
    %11 = vector.broadcast %cst_15 : f32 to vector<4x4xf32>
    %12 = vector.extract_strided_slice %10 {offsets = [0, 0], sizes = [4, 16], strides = [1, 1]} : vector<32x16xf32> to vector<4x16xf32>
    %cst_16 = arith.constant dense<0.000000e+00> : vector<4x16xf32>
    %13 = tpu.matmul %11, %2, %cst_16 {dimension_numbers = #tpu.dot_dimension_numbers<[1], [0], [0], [1], [0, 0, 1, 1], [], []>} : vector<4x4xf32>, vector<4x16xf32>, vector<4x16xf32> -> vector<4x16xf32>
    %14 = arith.addf %12, %13 : vector<4x16xf32>
    %15 = arith.negf %14 : vector<4x16xf32>
    %16 = math.exp %15 : vector<4x16xf32>
    %cst_17 = arith.constant 1.000000e+00 : f32
    %17 = vector.broadcast %cst_17 : f32 to vector<4x16xf32>
    %18 = arith.addf %17, %16 : vector<4x16xf32>
    %19 = arith.divf %17, %18 : vector<4x16xf32>
    %20 = math.tanh %14 : vector<4x16xf32>
    %21 = vector.extract_strided_slice %19 {offsets = [0, 0], sizes = [4, 4], strides = [1, 1]} : vector<4x16xf32> to vector<4x4xf32>
    %22 = vector.extract_strided_slice %19 {offsets = [0, 4], sizes = [4, 4], strides = [1, 1]} : vector<4x16xf32> to vector<4x4xf32>
    %23 = vector.extract_strided_slice %20 {offsets = [0, 8], sizes = [4, 4], strides = [1, 1]} : vector<4x16xf32> to vector<4x4xf32>
    %24 = vector.extract_strided_slice %19 {offsets = [0, 12], sizes = [4, 4], strides = [1, 1]} : vector<4x16xf32> to vector<4x4xf32>
    %25 = arith.mulf %22, %11 : vector<4x4xf32>
    %26 = arith.mulf %21, %23 : vector<4x4xf32>
    %27 = arith.addf %25, %26 : vector<4x4xf32>
    %28 = math.tanh %27 : vector<4x4xf32>
    %29 = arith.mulf %24, %28 : vector<4x4xf32>
    %30 = tpu.concatenate %29, %11 in 1 : vector<4x4xf32>, vector<4x4xf32> -> vector<4x8xf32>
    %cst_18 = arith.constant dense<0.000000e+00> : vector<4x16xf32>
    %31 = tpu.matmul %30, %4, %cst_18 {dimension_numbers = #tpu.dot_dimension_numbers<[1], [0], [0], [1], [0, 0, 1, 1], [], []>} : vector<4x8xf32>, vector<8x16xf32>, vector<4x16xf32> -> vector<4x16xf32>
    %32 = vector.broadcast %5 : vector<1x16xf32> to vector<4x16xf32>
    %33 = arith.addf %31, %32 : vector<4x16xf32>
    %34 = arith.negf %33 : vector<4x16xf32>
    %35 = math.exp %34 : vector<4x16xf32>
    %cst_19 = arith.constant 1.000000e+00 : f32
    %36 = vector.broadcast %cst_19 : f32 to vector<4x16xf32>
    %37 = arith.addf %36, %35 : vector<4x16xf32>
    %38 = arith.divf %36, %37 : vector<4x16xf32>
    %39 = math.tanh %33 : vector<4x16xf32>
    %40 = vector.extract_strided_slice %38 {offsets = [0, 0], sizes = [4, 4], strides = [1, 1]} : vector<4x16xf32> to vector<4x4xf32>
    %41 = vector.extract_strided_slice %38 {offsets = [0, 4], sizes = [4, 4], strides = [1, 1]} : vector<4x16xf32> to vector<4x4xf32>
    %42 = vector.extract_strided_slice %39 {offsets = [0, 8], sizes = [4, 4], strides = [1, 1]} : vector<4x16xf32> to vector<4x4xf32>
    %43 = vector.extract_strided_slice %38 {offsets = [0, 12], sizes = [4, 4], strides = [1, 1]} : vector<4x16xf32> to vector<4x4xf32>
    %44 = arith.mulf %41, %11 : vector<4x4xf32>
    %45 = arith.mulf %40, %42 : vector<4x4xf32>
    %46 = arith.addf %44, %45 : vector<4x4xf32>
    %47 = math.tanh %46 : vector<4x4xf32>
    %48 = arith.mulf %43, %47 : vector<4x4xf32>
    %c0_20 = arith.constant 0 : index
    %c0_21 = arith.constant 0 : index
    %49 = vector.load %arg9[%c0_20, %c0_21] : memref<32x4xf32, #tpu.memory_space<vmem>>, vector<4x4xf32>
    tpu.vector_store %arg9[%c0_20, %c0_21], %48 {strides = array<i32>} : memref<32x4xf32, #tpu.memory_space<vmem>>, vector<4x4xf32>,
    %50 = vector.extract_strided_slice %10 {offsets = [4, 0], sizes = [4, 16], strides = [1, 1]} : vector<32x16xf32> to vector<4x16xf32>
    %cst_22 = arith.constant dense<0.000000e+00> : vector<4x16xf32>
    %51 = tpu.matmul %29, %2, %cst_22 {dimension_numbers = #tpu.dot_dimension_numbers<[1], [0], [0], [1], [0, 0, 1, 1], [], []>} : vector<4x4xf32>, vector<4x16xf32>, vector<4x16xf32> -> vector<4x16xf32>
    %52 = arith.addf %50, %51 : vector<4x16xf32>
    %53 = arith.negf %52 : vector<4x16xf32>
    %54 = math.exp %53 : vector<4x16xf32>
    %cst_23 = arith.constant 1.000000e+00 : f32
    %55 = vector.broadcast %cst_23 : f32 to vector<4x16xf32>
    %56 = arith.addf %55, %54 : vector<4x16xf32>
    %57 = arith.divf %55, %56 : vector<4x16xf32>
    %58 = math.tanh %52 : vector<4x16xf32>
    %59 = vector.extract_strided_slice %57 {offsets = [0, 0], sizes = [4, 4], strides = [1, 1]} : vector<4x16xf32> to vector<4x4xf32>
    %60 = vector.extract_strided_slice %57 {offsets = [0, 4], sizes = [4, 4], strides = [1, 1]} : vector<4x16xf32> to vector<4x4xf32>
    %61 = vector.extract_strided_slice %58 {offsets = [0, 8], sizes = [4, 4], strides = [1, 1]} : vector<4x16xf32> to vector<4x4xf32>
    %62 = vector.extract_strided_slice %57 {offsets = [0, 12], sizes = [4, 4], strides = [1, 1]} : vector<4x16xf32> to vector<4x4xf32>
    %63 = arith.mulf %60, %27 : vector<4x4xf32>
    %64 = arith.mulf %59, %61 : vector<4x4xf32>
    %65 = arith.addf %63, %64 : vector<4x4xf32>
    %66 = math.tanh %65 : vector<4x4xf32>
    %67 = arith.mulf %62, %66 : vector<4x4xf32>
    %68 = tpu.concatenate %67, %48 in 1 : vector<4x4xf32>, vector<4x4xf32> -> vector<4x8xf32>
    %cst_24 = arith.constant dense<0.000000e+00> : vector<4x16xf32>
    %69 = tpu.matmul %68, %4, %cst_24 {dimension_numbers = #tpu.dot_dimension_numbers<[1], [0], [0], [1], [0, 0, 1, 1], [], []>} : vector<4x8xf32>, vector<8x16xf32>, vector<4x16xf32> -> vector<4x16xf32>
    %70 = vector.broadcast %5 : vector<1x16xf32> to vector<4x16xf32>
    %71 = arith.addf %69, %70 : vector<4x16xf32>
    %72 = arith.negf %71 : vector<4x16xf32>
    %73 = math.exp %72 : vector<4x16xf32>
    %cst_25 = arith.constant 1.000000e+00 : f32
    %74 = vector.broadcast %cst_25 : f32 to vector<4x16xf32>
    %75 = arith.addf %74, %73 : vector<4x16xf32>
    %76 = arith.divf %74, %75 : vector<4x16xf32>
    %77 = math.tanh %71 : vector<4x16xf32>
    %78 = vector.extract_strided_slice %76 {offsets = [0, 0], sizes = [4, 4], strides = [1, 1]} : vector<4x16xf32> to vector<4x4xf32>
    %79 = vector.extract_strided_slice %76 {offsets = [0, 4], sizes = [4, 4], strides = [1, 1]} : vector<4x16xf32> to vector<4x4xf32>
    %80 = vector.extract_strided_slice %77 {offsets = [0, 8], sizes = [4, 4], strides = [1, 1]} : vector<4x16xf32> to vector<4x4xf32>
    %81 = vector.extract_strided_slice %76 {offsets = [0, 12], sizes = [4, 4], strides = [1, 1]} : vector<4x16xf32> to vector<4x4xf32>
    %82 = arith.mulf %79, %46 : vector<4x4xf32>
    %83 = arith.mulf %78, %80 : vector<4x4xf32>
    %84 = arith.addf %82, %83 : vector<4x4xf32>
    %85 = math.tanh %84 : vector<4x4xf32>
    %86 = arith.mulf %81, %85 : vector<4x4xf32>
    %c4 = arith.constant 4 : index
    %c0_26 = arith.constant 0 : index
    %87 = vector.load %arg9[%c4, %c0_26] : memref<32x4xf32, #tpu.memory_space<vmem>>, vector<4x4xf32>
    tpu.vector_store %arg9[%c4, %c0_26], %86 {strides = array<i32>} : memref<32x4xf32, #tpu.memory_space<vmem>>, vector<4x4xf32>,
    %88 = vector.extract_strided_slice %10 {offsets = [8, 0], sizes = [4, 16], strides = [1, 1]} : vector<32x16xf32> to vector<4x16xf32>
    %cst_27 = arith.constant dense<0.000000e+00> : vector<4x16xf32>
    %89 = tpu.matmul %67, %2, %cst_27 {dimension_numbers = #tpu.dot_dimension_numbers<[1], [0], [0], [1], [0, 0, 1, 1], [], []>} : vector<4x4xf32>, vector<4x16xf32>, vector<4x16xf32> -> vector<4x16xf32>
    %90 = arith.addf %88, %89 : vector<4x16xf32>
    %91 = arith.negf %90 : vector<4x16xf32>
    %92 = math.exp %91 : vector<4x16xf32>
    %cst_28 = arith.constant 1.000000e+00 : f32
    %93 = vector.broadcast %cst_28 : f32 to vector<4x16xf32>
    %94 = arith.addf %93, %92 : vector<4x16xf32>
    %95 = arith.divf %93, %94 : vector<4x16xf32>
    %96 = math.tanh %90 : vector<4x16xf32>
    %97 = vector.extract_strided_slice %95 {offsets = [0, 0], sizes = [4, 4], strides = [1, 1]} : vector<4x16xf32> to vector<4x4xf32>
    %98 = vector.extract_strided_slice %95 {offsets = [0, 4], sizes = [4, 4], strides = [1, 1]} : vector<4x16xf32> to vector<4x4xf32>
    %99 = vector.extract_strided_slice %96 {offsets = [0, 8], sizes = [4, 4], strides = [1, 1]} : vector<4x16xf32> to vector<4x4xf32>
    %100 = vector.extract_strided_slice %95 {offsets = [0, 12], sizes = [4, 4], strides = [1, 1]} : vector<4x16xf32> to vector<4x4xf32>
    %101 = arith.mulf %98, %65 : vector<4x4xf32>
    %102 = arith.mulf %97, %99 : vector<4x4xf32>
    %103 = arith.addf %101, %102 : vector<4x4xf32>
    %104 = math.tanh %103 : vector<4x4xf32>
    %105 = arith.mulf %100, %104 : vector<4x4xf32>
    %106 = tpu.concatenate %105, %86 in 1 : vector<4x4xf32>, vector<4x4xf32> -> vector<4x8xf32>
    %cst_29 = arith.constant dense<0.000000e+00> : vector<4x16xf32>
    %107 = tpu.matmul %106, %4, %cst_29 {dimension_numbers = #tpu.dot_dimension_numbers<[1], [0], [0], [1], [0, 0, 1, 1], [], []>} : vector<4x8xf32>, vector<8x16xf32>, vector<4x16xf32> -> vector<4x16xf32>
    %108 = vector.broadcast %5 : vector<1x16xf32> to vector<4x16xf32>
    %109 = arith.addf %107, %108 : vector<4x16xf32>
    %110 = arith.negf %109 : vector<4x16xf32>
    %111 = math.exp %110 : vector<4x16xf32>
    %cst_30 = arith.constant 1.000000e+00 : f32
    %112 = vector.broadcast %cst_30 : f32 to vector<4x16xf32>
    %113 = arith.addf %112, %111 : vector<4x16xf32>
    %114 = arith.divf %112, %113 : vector<4x16xf32>
    %115 = math.tanh %109 : vector<4x16xf32>
    %116 = vector.extract_strided_slice %114 {offsets = [0, 0], sizes = [4, 4], strides = [1, 1]} : vector<4x16xf32> to vector<4x4xf32>
    %117 = vector.extract_strided_slice %114 {offsets = [0, 4], sizes = [4, 4], strides = [1, 1]} : vector<4x16xf32> to vector<4x4xf32>
    %118 = vector.extract_strided_slice %115 {offsets = [0, 8], sizes = [4, 4], strides = [1, 1]} : vector<4x16xf32> to vector<4x4xf32>
    %119 = vector.extract_strided_slice %114 {offsets = [0, 12], sizes = [4, 4], strides = [1, 1]} : vector<4x16xf32> to vector<4x4xf32>
    %120 = arith.mulf %117, %84 : vector<4x4xf32>
    %121 = arith.mulf %116, %118 : vector<4x4xf32>
    %122 = arith.addf %120, %121 : vector<4x4xf32>
    %123 = math.tanh %122 : vector<4x4xf32>
    %124 = arith.mulf %119, %123 : vector<4x4xf32>
    %c8 = arith.constant 8 : index
    %c0_31 = arith.constant 0 : index
    %125 = vector.load %arg9[%c8, %c0_31] : memref<32x4xf32, #tpu.memory_space<vmem>>, vector<4x4xf32>
    tpu.vector_store %arg9[%c8, %c0_31], %124 {strides = array<i32>} : memref<32x4xf32, #tpu.memory_space<vmem>>, vector<4x4xf32>,
    %126 = vector.extract_strided_slice %10 {offsets = [12, 0], sizes = [4, 16], strides = [1, 1]} : vector<32x16xf32> to vector<4x16xf32>
    %cst_32 = arith.constant dense<0.000000e+00> : vector<4x16xf32>
    %127 = tpu.matmul %105, %2, %cst_32 {dimension_numbers = #tpu.dot_dimension_numbers<[1], [0], [0], [1], [0, 0, 1, 1], [], []>} : vector<4x4xf32>, vector<4x16xf32>, vector<4x16xf32> -> vector<4x16xf32>
    %128 = arith.addf %126, %127 : vector<4x16xf32>
    %129 = arith.negf %128 : vector<4x16xf32>
    %130 = math.exp %129 : vector<4x16xf32>
    %cst_33 = arith.constant 1.000000e+00 : f32
    %131 = vector.broadcast %cst_33 : f32 to vector<4x16xf32>
    %132 = arith.addf %131, %130 : vector<4x16xf32>
    %133 = arith.divf %131, %132 : vector<4x16xf32>
    %134 = math.tanh %128 : vector<4x16xf32>
    %135 = vector.extract_strided_slice %133 {offsets = [0, 0], sizes = [4, 4], strides = [1, 1]} : vector<4x16xf32> to vector<4x4xf32>
    %136 = vector.extract_strided_slice %133 {offsets = [0, 4], sizes = [4, 4], strides = [1, 1]} : vector<4x16xf32> to vector<4x4xf32>
    %137 = vector.extract_strided_slice %134 {offsets = [0, 8], sizes = [4, 4], strides = [1, 1]} : vector<4x16xf32> to vector<4x4xf32>
    %138 = vector.extract_strided_slice %133 {offsets = [0, 12], sizes = [4, 4], strides = [1, 1]} : vector<4x16xf32> to vector<4x4xf32>
    %139 = arith.mulf %136, %103 : vector<4x4xf32>
    %140 = arith.mulf %135, %137 : vector<4x4xf32>
    %141 = arith.addf %139, %140 : vector<4x4xf32>
    %142 = math.tanh %141 : vector<4x4xf32>
    %143 = arith.mulf %138, %142 : vector<4x4xf32>
    %144 = tpu.concatenate %143, %124 in 1 : vector<4x4xf32>, vector<4x4xf32> -> vector<4x8xf32>
    %cst_34 = arith.constant dense<0.000000e+00> : vector<4x16xf32>
    %145 = tpu.matmul %144, %4, %cst_34 {dimension_numbers = #tpu.dot_dimension_numbers<[1], [0], [0], [1], [0, 0, 1, 1], [], []>} : vector<4x8xf32>, vector<8x16xf32>, vector<4x16xf32> -> vector<4x16xf32>
    %146 = vector.broadcast %5 : vector<1x16xf32> to vector<4x16xf32>
    %147 = arith.addf %145, %146 : vector<4x16xf32>
    %148 = arith.negf %147 : vector<4x16xf32>
    %149 = math.exp %148 : vector<4x16xf32>
    %cst_35 = arith.constant 1.000000e+00 : f32
    %150 = vector.broadcast %cst_35 : f32 to vector<4x16xf32>
    %151 = arith.addf %150, %149 : vector<4x16xf32>
    %152 = arith.divf %150, %151 : vector<4x16xf32>
    %153 = math.tanh %147 : vector<4x16xf32>
    %154 = vector.extract_strided_slice %152 {offsets = [0, 0], sizes = [4, 4], strides = [1, 1]} : vector<4x16xf32> to vector<4x4xf32>
    %155 = vector.extract_strided_slice %152 {offsets = [0, 4], sizes = [4, 4], strides = [1, 1]} : vector<4x16xf32> to vector<4x4xf32>
    %156 = vector.extract_strided_slice %153 {offsets = [0, 8], sizes = [4, 4], strides = [1, 1]} : vector<4x16xf32> to vector<4x4xf32>
    %157 = vector.extract_strided_slice %152 {offsets = [0, 12], sizes = [4, 4], strides = [1, 1]} : vector<4x16xf32> to vector<4x4xf32>
    %158 = arith.mulf %155, %122 : vector<4x4xf32>
    %159 = arith.mulf %154, %156 : vector<4x4xf32>
    %160 = arith.addf %158, %159 : vector<4x4xf32>
    %161 = math.tanh %160 : vector<4x4xf32>
    %162 = arith.mulf %157, %161 : vector<4x4xf32>
    %c12 = arith.constant 12 : index
    %c0_36 = arith.constant 0 : index
    %163 = vector.load %arg9[%c12, %c0_36] : memref<32x4xf32, #tpu.memory_space<vmem>>, vector<4x4xf32>
    tpu.vector_store %arg9[%c12, %c0_36], %162 {strides = array<i32>} : memref<32x4xf32, #tpu.memory_space<vmem>>, vector<4x4xf32>,
    %164 = vector.extract_strided_slice %10 {offsets = [16, 0], sizes = [4, 16], strides = [1, 1]} : vector<32x16xf32> to vector<4x16xf32>
    %cst_37 = arith.constant dense<0.000000e+00> : vector<4x16xf32>
    %165 = tpu.matmul %143, %2, %cst_37 {dimension_numbers = #tpu.dot_dimension_numbers<[1], [0], [0], [1], [0, 0, 1, 1], [], []>} : vector<4x4xf32>, vector<4x16xf32>, vector<4x16xf32> -> vector<4x16xf32>
    %166 = arith.addf %164, %165 : vector<4x16xf32>
    %167 = arith.negf %166 : vector<4x16xf32>
    %168 = math.exp %167 : vector<4x16xf32>
    %cst_38 = arith.constant 1.000000e+00 : f32
    %169 = vector.broadcast %cst_38 : f32 to vector<4x16xf32>
    %170 = arith.addf %169, %168 : vector<4x16xf32>
    %171 = arith.divf %169, %170 : vector<4x16xf32>
    %172 = math.tanh %166 : vector<4x16xf32>
    %173 = vector.extract_strided_slice %171 {offsets = [0, 0], sizes = [4, 4], strides = [1, 1]} : vector<4x16xf32> to vector<4x4xf32>
    %174 = vector.extract_strided_slice %171 {offsets = [0, 4], sizes = [4, 4], strides = [1, 1]} : vector<4x16xf32> to vector<4x4xf32>
    %175 = vector.extract_strided_slice %172 {offsets = [0, 8], sizes = [4, 4], strides = [1, 1]} : vector<4x16xf32> to vector<4x4xf32>
    %176 = vector.extract_strided_slice %171 {offsets = [0, 12], sizes = [4, 4], strides = [1, 1]} : vector<4x16xf32> to vector<4x4xf32>
    %177 = arith.mulf %174, %141 : vector<4x4xf32>
    %178 = arith.mulf %173, %175 : vector<4x4xf32>
    %179 = arith.addf %177, %178 : vector<4x4xf32>
    %180 = math.tanh %179 : vector<4x4xf32>
    %181 = arith.mulf %176, %180 : vector<4x4xf32>
    %182 = tpu.concatenate %181, %162 in 1 : vector<4x4xf32>, vector<4x4xf32> -> vector<4x8xf32>
    %cst_39 = arith.constant dense<0.000000e+00> : vector<4x16xf32>
    %183 = tpu.matmul %182, %4, %cst_39 {dimension_numbers = #tpu.dot_dimension_numbers<[1], [0], [0], [1], [0, 0, 1, 1], [], []>} : vector<4x8xf32>, vector<8x16xf32>, vector<4x16xf32> -> vector<4x16xf32>
    %184 = vector.broadcast %5 : vector<1x16xf32> to vector<4x16xf32>
    %185 = arith.addf %183, %184 : vector<4x16xf32>
    %186 = arith.negf %185 : vector<4x16xf32>
    %187 = math.exp %186 : vector<4x16xf32>
    %cst_40 = arith.constant 1.000000e+00 : f32
    %188 = vector.broadcast %cst_40 : f32 to vector<4x16xf32>
    %189 = arith.addf %188, %187 : vector<4x16xf32>
    %190 = arith.divf %188, %189 : vector<4x16xf32>
    %191 = math.tanh %185 : vector<4x16xf32>
    %192 = vector.extract_strided_slice %190 {offsets = [0, 0], sizes = [4, 4], strides = [1, 1]} : vector<4x16xf32> to vector<4x4xf32>
    %193 = vector.extract_strided_slice %190 {offsets = [0, 4], sizes = [4, 4], strides = [1, 1]} : vector<4x16xf32> to vector<4x4xf32>
    %194 = vector.extract_strided_slice %191 {offsets = [0, 8], sizes = [4, 4], strides = [1, 1]} : vector<4x16xf32> to vector<4x4xf32>
    %195 = vector.extract_strided_slice %190 {offsets = [0, 12], sizes = [4, 4], strides = [1, 1]} : vector<4x16xf32> to vector<4x4xf32>
    %196 = arith.mulf %193, %160 : vector<4x4xf32>
    %197 = arith.mulf %192, %194 : vector<4x4xf32>
    %198 = arith.addf %196, %197 : vector<4x4xf32>
    %199 = math.tanh %198 : vector<4x4xf32>
    %200 = arith.mulf %195, %199 : vector<4x4xf32>
    %c16 = arith.constant 16 : index
    %c0_41 = arith.constant 0 : index
    %201 = vector.load %arg9[%c16, %c0_41] : memref<32x4xf32, #tpu.memory_space<vmem>>, vector<4x4xf32>
    tpu.vector_store %arg9[%c16, %c0_41], %200 {strides = array<i32>} : memref<32x4xf32, #tpu.memory_space<vmem>>, vector<4x4xf32>,
    %202 = vector.extract_strided_slice %10 {offsets = [20, 0], sizes = [4, 16], strides = [1, 1]} : vector<32x16xf32> to vector<4x16xf32>
    %cst_42 = arith.constant dense<0.000000e+00> : vector<4x16xf32>
    %203 = tpu.matmul %181, %2, %cst_42 {dimension_numbers = #tpu.dot_dimension_numbers<[1], [0], [0], [1], [0, 0, 1, 1], [], []>} : vector<4x4xf32>, vector<4x16xf32>, vector<4x16xf32> -> vector<4x16xf32>
    %204 = arith.addf %202, %203 : vector<4x16xf32>
    %205 = arith.negf %204 : vector<4x16xf32>
    %206 = math.exp %205 : vector<4x16xf32>
    %cst_43 = arith.constant 1.000000e+00 : f32
    %207 = vector.broadcast %cst_43 : f32 to vector<4x16xf32>
    %208 = arith.addf %207, %206 : vector<4x16xf32>
    %209 = arith.divf %207, %208 : vector<4x16xf32>
    %210 = math.tanh %204 : vector<4x16xf32>
    %211 = vector.extract_strided_slice %209 {offsets = [0, 0], sizes = [4, 4], strides = [1, 1]} : vector<4x16xf32> to vector<4x4xf32>
    %212 = vector.extract_strided_slice %209 {offsets = [0, 4], sizes = [4, 4], strides = [1, 1]} : vector<4x16xf32> to vector<4x4xf32>
    %213 = vector.extract_strided_slice %210 {offsets = [0, 8], sizes = [4, 4], strides = [1, 1]} : vector<4x16xf32> to vector<4x4xf32>
    %214 = vector.extract_strided_slice %209 {offsets = [0, 12], sizes = [4, 4], strides = [1, 1]} : vector<4x16xf32> to vector<4x4xf32>
    %215 = arith.mulf %212, %179 : vector<4x4xf32>
    %216 = arith.mulf %211, %213 : vector<4x4xf32>
    %217 = arith.addf %215, %216 : vector<4x4xf32>
    %218 = math.tanh %217 : vector<4x4xf32>
    %219 = arith.mulf %214, %218 : vector<4x4xf32>
    %220 = tpu.concatenate %219, %200 in 1 : vector<4x4xf32>, vector<4x4xf32> -> vector<4x8xf32>
    %cst_44 = arith.constant dense<0.000000e+00> : vector<4x16xf32>
    %221 = tpu.matmul %220, %4, %cst_44 {dimension_numbers = #tpu.dot_dimension_numbers<[1], [0], [0], [1], [0, 0, 1, 1], [], []>} : vector<4x8xf32>, vector<8x16xf32>, vector<4x16xf32> -> vector<4x16xf32>
    %222 = vector.broadcast %5 : vector<1x16xf32> to vector<4x16xf32>
    %223 = arith.addf %221, %222 : vector<4x16xf32>
    %224 = arith.negf %223 : vector<4x16xf32>
    %225 = math.exp %224 : vector<4x16xf32>
    %cst_45 = arith.constant 1.000000e+00 : f32
    %226 = vector.broadcast %cst_45 : f32 to vector<4x16xf32>
    %227 = arith.addf %226, %225 : vector<4x16xf32>
    %228 = arith.divf %226, %227 : vector<4x16xf32>
    %229 = math.tanh %223 : vector<4x16xf32>
    %230 = vector.extract_strided_slice %228 {offsets = [0, 0], sizes = [4, 4], strides = [1, 1]} : vector<4x16xf32> to vector<4x4xf32>
    %231 = vector.extract_strided_slice %228 {offsets = [0, 4], sizes = [4, 4], strides = [1, 1]} : vector<4x16xf32> to vector<4x4xf32>
    %232 = vector.extract_strided_slice %229 {offsets = [0, 8], sizes = [4, 4], strides = [1, 1]} : vector<4x16xf32> to vector<4x4xf32>
    %233 = vector.extract_strided_slice %228 {offsets = [0, 12], sizes = [4, 4], strides = [1, 1]} : vector<4x16xf32> to vector<4x4xf32>
    %234 = arith.mulf %231, %198 : vector<4x4xf32>
    %235 = arith.mulf %230, %232 : vector<4x4xf32>
    %236 = arith.addf %234, %235 : vector<4x4xf32>
    %237 = math.tanh %236 : vector<4x4xf32>
    %238 = arith.mulf %233, %237 : vector<4x4xf32>
    %c20 = arith.constant 20 : index
    %c0_46 = arith.constant 0 : index
    %239 = vector.load %arg9[%c20, %c0_46] : memref<32x4xf32, #tpu.memory_space<vmem>>, vector<4x4xf32>
    tpu.vector_store %arg9[%c20, %c0_46], %238 {strides = array<i32>} : memref<32x4xf32, #tpu.memory_space<vmem>>, vector<4x4xf32>,
    %240 = vector.extract_strided_slice %10 {offsets = [24, 0], sizes = [4, 16], strides = [1, 1]} : vector<32x16xf32> to vector<4x16xf32>
    %cst_47 = arith.constant dense<0.000000e+00> : vector<4x16xf32>
    %241 = tpu.matmul %219, %2, %cst_47 {dimension_numbers = #tpu.dot_dimension_numbers<[1], [0], [0], [1], [0, 0, 1, 1], [], []>} : vector<4x4xf32>, vector<4x16xf32>, vector<4x16xf32> -> vector<4x16xf32>
    %242 = arith.addf %240, %241 : vector<4x16xf32>
    %243 = arith.negf %242 : vector<4x16xf32>
    %244 = math.exp %243 : vector<4x16xf32>
    %cst_48 = arith.constant 1.000000e+00 : f32
    %245 = vector.broadcast %cst_48 : f32 to vector<4x16xf32>
    %246 = arith.addf %245, %244 : vector<4x16xf32>
    %247 = arith.divf %245, %246 : vector<4x16xf32>
    %248 = math.tanh %242 : vector<4x16xf32>
    %249 = vector.extract_strided_slice %247 {offsets = [0, 0], sizes = [4, 4], strides = [1, 1]} : vector<4x16xf32> to vector<4x4xf32>
    %250 = vector.extract_strided_slice %247 {offsets = [0, 4], sizes = [4, 4], strides = [1, 1]} : vector<4x16xf32> to vector<4x4xf32>
    %251 = vector.extract_strided_slice %248 {offsets = [0, 8], sizes = [4, 4], strides = [1, 1]} : vector<4x16xf32> to vector<4x4xf32>
    %252 = vector.extract_strided_slice %247 {offsets = [0, 12], sizes = [4, 4], strides = [1, 1]} : vector<4x16xf32> to vector<4x4xf32>
    %253 = arith.mulf %250, %217 : vector<4x4xf32>
    %254 = arith.mulf %249, %251 : vector<4x4xf32>
    %255 = arith.addf %253, %254 : vector<4x4xf32>
    %256 = math.tanh %255 : vector<4x4xf32>
    %257 = arith.mulf %252, %256 : vector<4x4xf32>
    %258 = tpu.concatenate %257, %238 in 1 : vector<4x4xf32>, vector<4x4xf32> -> vector<4x8xf32>
    %cst_49 = arith.constant dense<0.000000e+00> : vector<4x16xf32>
    %259 = tpu.matmul %258, %4, %cst_49 {dimension_numbers = #tpu.dot_dimension_numbers<[1], [0], [0], [1], [0, 0, 1, 1], [], []>} : vector<4x8xf32>, vector<8x16xf32>, vector<4x16xf32> -> vector<4x16xf32>
    %260 = vector.broadcast %5 : vector<1x16xf32> to vector<4x16xf32>
    %261 = arith.addf %259, %260 : vector<4x16xf32>
    %262 = arith.negf %261 : vector<4x16xf32>
    %263 = math.exp %262 : vector<4x16xf32>
    %cst_50 = arith.constant 1.000000e+00 : f32
    %264 = vector.broadcast %cst_50 : f32 to vector<4x16xf32>
    %265 = arith.addf %264, %263 : vector<4x16xf32>
    %266 = arith.divf %264, %265 : vector<4x16xf32>
    %267 = math.tanh %261 : vector<4x16xf32>
    %268 = vector.extract_strided_slice %266 {offsets = [0, 0], sizes = [4, 4], strides = [1, 1]} : vector<4x16xf32> to vector<4x4xf32>
    %269 = vector.extract_strided_slice %266 {offsets = [0, 4], sizes = [4, 4], strides = [1, 1]} : vector<4x16xf32> to vector<4x4xf32>
    %270 = vector.extract_strided_slice %267 {offsets = [0, 8], sizes = [4, 4], strides = [1, 1]} : vector<4x16xf32> to vector<4x4xf32>
    %271 = vector.extract_strided_slice %266 {offsets = [0, 12], sizes = [4, 4], strides = [1, 1]} : vector<4x16xf32> to vector<4x4xf32>
    %272 = arith.mulf %269, %236 : vector<4x4xf32>
    %273 = arith.mulf %268, %270 : vector<4x4xf32>
    %274 = arith.addf %272, %273 : vector<4x4xf32>
    %275 = math.tanh %274 : vector<4x4xf32>
    %276 = arith.mulf %271, %275 : vector<4x4xf32>
    %c24 = arith.constant 24 : index
    %c0_51 = arith.constant 0 : index
    %277 = vector.load %arg9[%c24, %c0_51] : memref<32x4xf32, #tpu.memory_space<vmem>>, vector<4x4xf32>
    tpu.vector_store %arg9[%c24, %c0_51], %276 {strides = array<i32>} : memref<32x4xf32, #tpu.memory_space<vmem>>, vector<4x4xf32>,
    %278 = vector.extract_strided_slice %10 {offsets = [28, 0], sizes = [4, 16], strides = [1, 1]} : vector<32x16xf32> to vector<4x16xf32>
    %cst_52 = arith.constant dense<0.000000e+00> : vector<4x16xf32>
    %279 = tpu.matmul %257, %2, %cst_52 {dimension_numbers = #tpu.dot_dimension_numbers<[1], [0], [0], [1], [0, 0, 1, 1], [], []>} : vector<4x4xf32>, vector<4x16xf32>, vector<4x16xf32> -> vector<4x16xf32>
    %280 = arith.addf %278, %279 : vector<4x16xf32>
    %281 = arith.negf %280 : vector<4x16xf32>
    %282 = math.exp %281 : vector<4x16xf32>
    %cst_53 = arith.constant 1.000000e+00 : f32
    %283 = vector.broadcast %cst_53 : f32 to vector<4x16xf32>
    %284 = arith.addf %283, %282 : vector<4x16xf32>
    %285 = arith.divf %283, %284 : vector<4x16xf32>
    %286 = math.tanh %280 : vector<4x16xf32>
    %287 = vector.extract_strided_slice %285 {offsets = [0, 0], sizes = [4, 4], strides = [1, 1]} : vector<4x16xf32> to vector<4x4xf32>
    %288 = vector.extract_strided_slice %285 {offsets = [0, 4], sizes = [4, 4], strides = [1, 1]} : vector<4x16xf32> to vector<4x4xf32>
    %289 = vector.extract_strided_slice %286 {offsets = [0, 8], sizes = [4, 4], strides = [1, 1]} : vector<4x16xf32> to vector<4x4xf32>
    %290 = vector.extract_strided_slice %285 {offsets = [0, 12], sizes = [4, 4], strides = [1, 1]} : vector<4x16xf32> to vector<4x4xf32>
    %291 = arith.mulf %288, %255 : vector<4x4xf32>
    %292 = arith.mulf %287, %289 : vector<4x4xf32>
    %293 = arith.addf %291, %292 : vector<4x4xf32>
    %294 = math.tanh %293 : vector<4x4xf32>
    %295 = arith.mulf %290, %294 : vector<4x4xf32>
    %296 = tpu.concatenate %295, %276 in 1 : vector<4x4xf32>, vector<4x4xf32> -> vector<4x8xf32>
    %cst_54 = arith.constant dense<0.000000e+00> : vector<4x16xf32>
    %297 = tpu.matmul %296, %4, %cst_54 {dimension_numbers = #tpu.dot_dimension_numbers<[1], [0], [0], [1], [0, 0, 1, 1], [], []>} : vector<4x8xf32>, vector<8x16xf32>, vector<4x16xf32> -> vector<4x16xf32>
    %298 = vector.broadcast %5 : vector<1x16xf32> to vector<4x16xf32>
    %299 = arith.addf %297, %298 : vector<4x16xf32>
    %300 = arith.negf %299 : vector<4x16xf32>
    %301 = math.exp %300 : vector<4x16xf32>
    %cst_55 = arith.constant 1.000000e+00 : f32
    %302 = vector.broadcast %cst_55 : f32 to vector<4x16xf32>
    %303 = arith.addf %302, %301 : vector<4x16xf32>
    %304 = arith.divf %302, %303 : vector<4x16xf32>
    %305 = math.tanh %299 : vector<4x16xf32>
    %306 = vector.extract_strided_slice %304 {offsets = [0, 0], sizes = [4, 4], strides = [1, 1]} : vector<4x16xf32> to vector<4x4xf32>
    %307 = vector.extract_strided_slice %304 {offsets = [0, 4], sizes = [4, 4], strides = [1, 1]} : vector<4x16xf32> to vector<4x4xf32>
    %308 = vector.extract_strided_slice %305 {offsets = [0, 8], sizes = [4, 4], strides = [1, 1]} : vector<4x16xf32> to vector<4x4xf32>
    %309 = vector.extract_strided_slice %304 {offsets = [0, 12], sizes = [4, 4], strides = [1, 1]} : vector<4x16xf32> to vector<4x4xf32>
    %310 = arith.mulf %307, %274 : vector<4x4xf32>
    %311 = arith.mulf %306, %308 : vector<4x4xf32>
    %312 = arith.addf %310, %311 : vector<4x4xf32>
    %313 = math.tanh %312 : vector<4x4xf32>
    %314 = arith.mulf %309, %313 : vector<4x4xf32>
    %c28 = arith.constant 28 : index
    %c0_56 = arith.constant 0 : index
    %315 = vector.load %arg9[%c28, %c0_56] : memref<32x4xf32, #tpu.memory_space<vmem>>, vector<4x4xf32>
    tpu.vector_store %arg9[%c28, %c0_56], %314 {strides = array<i32>} : memref<32x4xf32, #tpu.memory_space<vmem>>, vector<4x4xf32>,
    %c0_57 = arith.constant 0 : index
    %c0_58 = arith.constant 0 : index
    %316 = vector.load %arg9[%c0_57, %c0_58] : memref<32x4xf32, #tpu.memory_space<vmem>>, vector<32x4xf32>
    %cst_59 = arith.constant dense<0.000000e+00> : vector<32x1xf32>
    %317 = tpu.matmul %316, %6, %cst_59 {dimension_numbers = #tpu.dot_dimension_numbers<[1], [0], [0], [1], [0, 0, 1, 1], [], []>} : vector<32x4xf32>, vector<4x1xf32>, vector<32x1xf32> -> vector<32x1xf32>
    %318 = vector.broadcast %7 : vector<1x1xf32> to vector<32x1xf32>
    %319 = arith.addf %317, %318 : vector<32x1xf32>
    %c0_60 = arith.constant 0 : index
    %c0_61 = arith.constant 0 : index
    %320 = vector.load %arg8[%c0_60, %c0_61] : memref<32x1xf32, #tpu.memory_space<vmem>>, vector<32x1xf32>
    tpu.vector_store %arg8[%c0_60, %c0_61], %319 {strides = array<i32>} : memref<32x1xf32, #tpu.memory_space<vmem>>, vector<32x1xf32>,
    return
  }
}

</mosaic_0001>

<bundles_post_ra>
// kernel: tpu_custom_call.1
= control target key start
LH: loop header
LB: loop body
LE: loop exit
PB: predicated region body
PF: predicated region fallthrough
CT: control target
= control target key end

     0   :  { %vm58_vm0 = vcmask 1041408   ;;  %vm45_vm1 = vcmask 15360   ;;  %vm95_vm2 = vcmask 1043456   ;;  %v1462_v4 = vmov 0.0   ;;  %s1463_s13 = smov 120   ;;  %s1465_s14 = smov 8   ;;  %s1822_s1 = inlined_call_operand.vmem [shape: f32[2,16], index: 1, kind: input, shape index: {}]   ;;  %s1823_s0 = inlined_call_operand.vmem [shape: f32[32,2], index: 0, kind: input, shape index: {}]   ;;  %s1824_s2 = inlined_call_operand.vmem [shape: f32[4,16], index: 2, kind: input, shape index: {}]   ;;  %s1825_s3 = inlined_call_operand.vmem [shape: f32[1,16], index: 3, kind: input, shape index: {}]   ;;  %s1826_s4 = inlined_call_operand.vmem [shape: f32[8,16], index: 4, kind: input, shape index: {}]   ;;  %s1827_s5 = inlined_call_operand.vmem [shape: f32[1,16], index: 5, kind: input, shape index: {}]   ;;  %s1828_s6 = inlined_call_operand.vmem [shape: f32[4,1], index: 6, kind: input, shape index: {}]   ;;  %s1829_s7 = inlined_call_operand.<no memory space> [shape: f32[1,1], index: 7, kind: input, shape index: {}]   ;;  %s1830_s8 = inlined_call_operand.vmem [shape: f32[32,1], index: 8, kind: output, shape index: {}]  }
   0x1   :  { %v35_v0 = vld [vmem:[%s1822_s1] sm:$0x3]  ;;  %v32_v1 = vld [vmem:[%s1823_s0 + $0x8] sm:$0xff]  ;;  %v34_v31 = vld [vmem:[%s1823_s0 + $0x18] sm:$0xff]  ;;  %s1466_s19 = smov 116   ;;  %vm91_vm7 = vcmask 31744  }
   0x2   :  { %v1521_v2 = vld [vmem:[%s1824_s2] sm:$0xf]  ;;  %1322 = vmatpush.msk.msra.mxu1 %vm58_vm0, %v35_v0  ;;  %1273 = vmatpush.msk.msra.mxu0 %vm58_vm0, %v35_v0  ;;  %v33_v32 = vld [vmem:[%s1823_s0 + $0x10] sm:$0xff]  ;;  %vm165_vm8 = vcmask 64512  }
   0x3   :  { %v31_v3 = vld [vmem:[%s1823_s0] sm:$0xff]  ;;  %1275 = vmatmul.msk.f32.vlgmr.msra.gmra.mxu1 %vm45_vm1, %v32_v1  ;;  %1324 = vmatpush.msk.msra.mxu3 %vm58_vm0, %v35_v0 }
   0x4   :  { %1274 = vmatmul.msk.f32.vlgmr.msra.gmra.mxu0 %vm45_vm1, %v31_v3  ;;  %1278 = vmatpush.msk.msrb.mxu1 %vm95_vm2, %v1521_v2  ;;  %v1543_v7 = vld [vmem:[%s1825_s3] ss:$0 sm:$0xff]  ;;  %s1464_s3 = smov 4  }
   0x5   :  { %1323 = vmatpush.msk.msra.mxu2 %vm58_vm0, %v35_v0  ;;  %1282 = vmatpush.msk.msrb.mxu3 %vm95_vm2, %v1521_v2  ;;  %v1567_v35 = vld [vmem:[%s1826_s4] sm:$0xff] }
   0x6   :  { %1307 = vmatpush.msk.msrb.mxu0 %vm95_vm2, %v1521_v2  ;;  %1277 = vmatmul.msk.f32.vlgmr.msra.gmra.mxu3 %vm45_vm1, %v34_v31  ;;  %v1590_v43 = vld [vmem:[%s1827_s5] ss:$0 sm:$0xff] }
   0x7   :  { %1276 = vmatmul.msk.f32.vlgmr.msra.gmra.mxu2 %vm45_vm1, %v33_v32  ;;  %326 = vmatpush.msra.mxu1 %v1567_v35 }
   0x8   :  { %184 = vmatpush.msrb.mxu2 %v1567_v35  ;;  %465 = vmatpush.msra.mxu3 %v1567_v35 }
   0xa   :  { %1287 = vmatpush.msk.msra.mxu2 %vm95_vm2, %v1521_v2 }
   0xb   :  { %115 = vmatmul.f32.vlgmr.msrb.gmra.mxu1 %v1462_v4 }
   0xc   :  { %1292 = vmatpush.msk.msrb.mxu1 %vm95_vm2, %v1521_v2 }
  0x80   :  { %v1538_v5 = vpop.f32.mrf.mxu1 }
  0x81   :  { %v79_v6 = vpop.f32.mrf.mxu0 }
  0x82   :  { %v1546_v8 = vadd.f32 %v1543_v7, %v79_v6 }
  0x88   :  { %v116_v9 = vpop.f32.mrf.mxu1 }
  0x89   :  { %v119_v10 = vadd.f32 %v116_v9, %v1546_v8  ;;  %v1582_v38 = vpop.f32.mrf.mxu3 }
  0x8a   :  { %v1584_v39 = vpop.f32.mrf.mxu2 }
  0x8b   :  { %1333 = vtanh.f32 %v119_v10  ;;  %v1279_v12 = vmul.f32 -1.442695, %v119_v10 }
  0x8d   :  { %1335 = vpow2.f32 %v1279_v12 }
  0x91   :  { %v1334_v11 = vpop.eup %1333 }
  0x92   :  { %142 = vrot.lane.b32.xlu0 %v1334_v11, %s1463_s13 }
  0x93   :  { %v1336_v13 = vpop.eup %1335 }
  0x94   :  { %v123_v14 = vadd.f32 1.0, %v1336_v13 }
  0x96   :  { %1337 = vrcp.f32 %v123_v14  ;;  %v135_v20 = vand.u32 2147483648, %v123_v14  ;;  %vm129_vm4 = vweird.f32 %v123_v14  ;;  %v133_v21 = vand.u32 2147483647, %v123_v14 }
  0x98   :  { %v136_v23 = vor.u32 1.1754944e-38, %v135_v20  ;;  %vm134_vm6 = vcmp.eq.f32.partialorder %v133_v21, 8.507059e+37 }
  0x9c   :  { %v1338_v15 = vpop.eup %1337 }
  0x9d   :  { %v125_v16 = vmul.f32 %v1338_v15, %v123_v14  ;;  %vm130_vm3 = vweird.f32 %v1338_v15 }
  0x9e   :  { %vm131_vm5 = vmor %vm129_vm4, %vm130_vm3 }
  0x9f   :  { %v126_v17 = vsub.f32 1.0, %v125_v16 }
  0xa1   :  { %v127_v18 = vmul.f32 %v1338_v15, %v126_v17 }
  0xa3   :  { %v128_v19 = vadd.f32 %v1338_v15, %v127_v18 }
  0xa5   :  { %v132_v22 = vsel %vm131_vm5, %v1338_v15, %v128_v19 }
  0xa6   :  { %v137_v25 = vsel %vm134_vm6, %v136_v23, %v132_v22 }
  0xa7   :  { %v140_v27 = vmul.f32 0.0, %v137_v25 }
 0x104   :  { %v143_v24 = vpop.permute.xlu0 %142 }
 0x105   :  { %v145_v26 = vmul.f32 %v143_v24, %v137_v25 }
 0x107   :  { %147 = vrot.lane.b32.xlu0 %v145_v26, %s1464_s3 }
 0x179   :  { %v148_v28 = vpop.permute.xlu0 %147 }
 0x17a   :  { %v1551_v29 = vadd.f32 %v148_v28, %v140_v27 }
 0x17c   :  { %1339 = vtanh.f32 %v1551_v29  ;;  %v279_v17 = vrot.slane %v1551_v29, 4 }
 0x182   :  { %v1340_v30 = vpop.eup %1339 }
 0x183   :  { %153 = vrot.lane.b32.xlu1 %v1340_v30, %s1465_s14 }
 0x1f5   :  { %v154_v33 = vpop.permute.xlu1 %153 }
 0x1f6   :  { %v156_v34 = vmul.f32 %v154_v33, %v137_v25 }
 0x1f8   :  { %158 = vrot.lane.b32.xlu1 %v156_v34, %s1466_s19 }
 0x26a   :  { %v159_v36 = vpop.permute.xlu1 %158 }
 0x26b   :  { %v161_v37 = vsel %vm91_vm7, %v159_v36, 0.0  ;;  %1283 = vmatmul.msk.f32.vlgmr.msrb.gmra.mxu3 %vm91_vm7, %v159_v36 }
 0x26c   :  { %1280 = vmatmul.msk.f32.vlgmr.msrb.gmra.mxu2 %vm165_vm8, %v161_v37  ;;  %1297 = vmatpush.msk.msrb.mxu3 %vm95_vm2, %v1521_v2 }
 0x26d   :  { %606 = vmatpush.msrb.mxu2 %v1567_v35 }
 0x2ee   :  { %v251_v40 = vpop.f32.mrf.mxu3 }
 0x2ef   :  { %v255_v41 = vrot.slane %v251_v40, 4  ;;  %v186_v44 = vpop.f32.mrf.mxu2  ;;  %v1620_v40 = vadd.f32 %v1543_v7, %v1538_v5 }
 0x2f0   :  { %v187_v45 = vadd.f32 %v1590_v43, %v186_v44 }
 0x2f1   :  { %v257_v42 = vadd.f32 %v255_v41, %v1546_v8 }
 0x2f2   :  { %v1281_v49 = vmul.f32 -1.442695, %v187_v45 }
 0x2f3   :  { %1341 = vtanh.f32 %v257_v42  ;;  %v1284_v48 = vmul.f32 -1.442695, %v257_v42 }
 0x2f4   :  { %1343 = vtanh.f32 %v187_v45 }
 0x2f5   :  { %1345 = vpow2.f32 %v1284_v48 }
 0x2f6   :  { %1347 = vpow2.f32 %v1281_v49 }
 0x2f9   :  { %v1342_v46 = vpop.eup %1341 }
 0x2fa   :  { %283 = vrot.lane.b32.xlu2 %v1342_v46, %s1463_s13  ;;  %v1344_v47 = vpop.eup %1343 }
 0x2fb   :  { %v1346_v50 = vpop.eup %1345 }
 0x2fc   :  { %v261_v51 = vadd.f32 1.0, %v1346_v50  ;;  %v1348_v52 = vpop.eup %1347 }
 0x2fd   :  { %v192_v53 = vadd.f32 1.0, %v1348_v52 }
 0x2fe   :  { %1349 = vrcp.f32 %v261_v51  ;;  %v273_v62 = vand.u32 2147483648, %v261_v51  ;;  %vm267_vm10 = vweird.f32 %v261_v51  ;;  %v271_v63 = vand.u32 2147483647, %v261_v51 }
 0x2ff   :  { %1351 = vrcp.f32 %v192_v53  ;;  %v204_v10 = vand.u32 2147483648, %v192_v53  ;;  %vm198_vm14 = vweird.f32 %v192_v53  ;;  %v202_v11 = vand.u32 2147483647, %v192_v53 }
 0x300   :  { %v274_v3 = vor.u32 1.1754944e-38, %v273_v62  ;;  %vm272_vm12 = vcmp.eq.f32.partialorder %v271_v63, 8.507059e+37 }
 0x301   :  { %v205_v13 = vor.u32 1.1754944e-38, %v204_v10  ;;  %vm203_vm0 = vcmp.eq.f32.partialorder %v202_v11, 8.507059e+37 }
 0x302   :  { %211 = vrot.lane.b32.xlu2 %v1344_v47, %s1463_s13 }
 0x304   :  { %v1350_v54 = vpop.eup %1349 }
 0x305   :  { %v263_v55 = vmul.f32 %v1350_v54, %v261_v51  ;;  %v1352_v57 = vpop.eup %1351  ;;  %vm268_vm9 = vweird.f32 %v1350_v54 }
 0x306   :  { %v194_v59 = vmul.f32 %v1352_v57, %v192_v53  ;;  %vm269_vm11 = vmor %vm267_vm10, %vm268_vm9  ;;  %vm199_vm13 = vweird.f32 %v1352_v57 }
 0x307   :  { %v264_v56 = vsub.f32 1.0, %v263_v55  ;;  %vm200_vm15 = vmor %vm198_vm14, %vm199_vm13 }
 0x308   :  { %v195_v61 = vsub.f32 1.0, %v194_v59 }
 0x309   :  { %v265_v58 = vmul.f32 %v1350_v54, %v264_v56 }
 0x30a   :  { %v196_v1 = vmul.f32 %v1352_v57, %v195_v61 }
 0x30b   :  { %v266_v60 = vadd.f32 %v1350_v54, %v265_v58 }
 0x30c   :  { %v197_v9 = vadd.f32 %v1352_v57, %v196_v1 }
 0x30d   :  { %v270_v0 = vsel %vm269_vm11, %v1350_v54, %v266_v60 }
 0x30e   :  { %v275_v6 = vsel %vm272_vm12, %v274_v3, %v270_v0  ;;  %v201_v12 = vsel %vm200_vm15, %v1352_v57, %v197_v9 }
 0x30f   :  { %v206_v15 = vsel %vm203_vm0, %v205_v13, %v201_v12  ;;  %v281_v18 = vmul.f32 %v279_v17, %v275_v6 }
 0x310   :  { %v209_v21 = vmul.f32 0.0, %v206_v15 }
 0x354   :  { %v284_v4 = vpop.permute.xlu2 %283 }
 0x355   :  { %v286_v8 = vmul.f32 %v284_v4, %v275_v6 }
 0x357   :  { %288 = vrot.lane.b32.xlu0 %v286_v8, %s1464_s3 }
 0x35c   :  { %v212_v14 = vpop.permute.xlu2 %211 }
 0x35d   :  { %v214_v16 = vmul.f32 %v212_v14, %v206_v15 }
 0x35f   :  { %216 = vrot.lane.b32.xlu1 %v214_v16, %s1464_s3 }
 0x3c9   :  { %v289_v19 = vpop.permute.xlu0 %288 }
 0x3ca   :  { %v1598_v20 = vadd.f32 %v289_v19, %v281_v18 }
 0x3cc   :  { %1353 = vtanh.f32 %v1598_v20  ;;  %v420_v16 = vrot.slane %v1598_v20, 4 }
 0x3d1   :  { %v217_v22 = vpop.permute.xlu1 %216 }
 0x3d2   :  { %v1354_v23 = vpop.eup %1353  ;;  %v1601_v24 = vadd.f32 %v217_v22, %v209_v21 }
 0x3d3   :  { %294 = vrot.lane.b32.xlu2 %v1354_v23, %s1465_s14 }
 0x3d4   :  { %1355 = vtanh.f32 %v1601_v24 }
 0x3da   :  { %v1356_v25 = vpop.eup %1355 }
 0x3db   :  { %222 = vrot.lane.b32.xlu0 %v1356_v25, %s1465_s14 }
 0x42d   :  { %v295_v26 = vpop.permute.xlu2 %294 }
 0x42e   :  { %v297_v27 = vmul.f32 %v295_v26, %v275_v6 }
 0x430   :  { %v373_v28 = vrot.slane %v297_v27, 4  ;;  %299 = vrot.lane.b32.xlu2 %v297_v27, %s1466_s19 }
 0x432   :  { %374 = vrot.lane.b32.xlu1 %v373_v28, %s1466_s19 }
 0x44d   :  { %v223_v29 = vpop.permute.xlu0 %222 }
 0x44e   :  { %v1608_v30 = vmul.f32 %v223_v29, %v206_v15 }
 0x450   :  { %v302_v31 = vrot.slane %v1608_v30, 4 }
 0x452   :  { %303 = vrot.lane.b32.xlu0 %v302_v31, %s1463_s13 }
 0x48a   :  { %v300_v33 = vpop.permute.xlu2 %299 }
 0x4a4   :  { %v375_v32 = vpop.permute.xlu1 %374 }
 0x4a5   :  { %1288 = vmatmul.msk.f32.vlgmr.msra.gmra.mxu2 %vm91_vm7, %v375_v32 }
 0x4a6   :  { %1302 = vmatpush.msk.msra.mxu2 %vm95_vm2, %v1521_v2 }
 0x4c4   :  { %v304_v34 = vpop.permute.xlu0 %303 }
 0x4c5   :  { %v306_v36 = vsel %vm91_vm7, %v300_v33, %v304_v34 }
 0x4c6   :  { %v308_v37 = vrot.slane %v306_v36, 4 }
 0x4c8   :  { %1285 = vmatmul.msk.f32.vlgmr.msra.gmra.mxu1 %vm165_vm8, %v308_v37 }
 0x4c9   :  { %745 = vmatpush.msra.mxu1 %v1567_v35 }
 0x528   :  { %v395_v41 = vpop.f32.mrf.mxu2 }
 0x529   :  { %v398_v42 = vadd.f32 %v395_v41, %v1620_v40 }
 0x52b   :  { %1357 = vtanh.f32 %v398_v42  ;;  %v1289_v48 = vmul.f32 -1.442695, %v398_v42 }
 0x531   :  { %v1358_v44 = vpop.eup %1357 }
 0x532   :  { %424 = vrot.lane.b32.xlu2 %v1358_v44, %s1463_s13 }
 0x545   :  { %v328_v45 = vpop.f32.mrf.mxu1 }
 0x546   :  { %v329_v46 = vadd.f32 %v1590_v43, %v328_v45 }
 0x548   :  { %1359 = vtanh.f32 %v329_v46  ;;  %v1286_v62 = vmul.f32 -1.442695, %v329_v46 }
 0x549   :  { %1361 = vpow2.f32 %v1289_v48 }
 0x54e   :  { %v1360_v47 = vpop.eup %1359 }
 0x54f   :  { %353 = vrot.lane.b32.xlu1 %v1360_v47, %s1463_s13  ;;  %v1362_v49 = vpop.eup %1361 }
 0x550   :  { %v402_v50 = vadd.f32 1.0, %v1362_v49 }
 0x552   :  { %1363 = vrcp.f32 %v402_v50  ;;  %v414_v55 = vand.u32 2147483648, %v402_v50  ;;  %vm408_vm3 = vweird.f32 %v402_v50  ;;  %v412_v56 = vand.u32 2147483647, %v402_v50 }
 0x553   :  { %1365 = vpow2.f32 %v1286_v62 }
 0x554   :  { %v415_v58 = vor.u32 1.1754944e-38, %v414_v55  ;;  %vm413_vm5 = vcmp.eq.f32.partialorder %v412_v56, 8.507059e+37 }
 0x558   :  { %v1364_v5 = vpop.eup %1363 }
 0x559   :  { %v404_v51 = vmul.f32 %v1364_v5, %v402_v50  ;;  %vm409_vm1 = vweird.f32 %v1364_v5  ;;  %v1366_v63 = vpop.eup %1365 }
 0x55a   :  { %vm410_vm4 = vmor %vm408_vm3, %vm409_vm1  ;;  %v334_v0 = vadd.f32 1.0, %v1366_v63 }
 0x55b   :  { %v405_v52 = vsub.f32 1.0, %v404_v51 }
 0x55c   :  { %1367 = vrcp.f32 %v334_v0  ;;  %v346_v9 = vand.u32 2147483648, %v334_v0  ;;  %vm340_vm9 = vweird.f32 %v334_v0  ;;  %v344_v10 = vand.u32 2147483647, %v334_v0 }
 0x55d   :  { %v406_v53 = vmul.f32 %v1364_v5, %v405_v52 }
 0x55e   :  { %v347_v12 = vor.u32 1.1754944e-38, %v346_v9  ;;  %vm345_vm11 = vcmp.eq.f32.partialorder %v344_v10, 8.507059e+37 }
 0x55f   :  { %v407_v54 = vadd.f32 %v1364_v5, %v406_v53 }
 0x561   :  { %v411_v57 = vsel %vm410_vm4, %v1364_v5, %v407_v54 }
 0x562   :  { %v416_v60 = vsel %vm413_vm5, %v415_v58, %v411_v57  ;;  %v1368_v1 = vpop.eup %1367 }
 0x563   :  { %v336_v3 = vmul.f32 %v1368_v1, %v334_v0  ;;  %vm341_vm6 = vweird.f32 %v1368_v1  ;;  %v422_v17 = vmul.f32 %v420_v16, %v416_v60 }
 0x564   :  { %vm342_vm10 = vmor %vm340_vm9, %vm341_vm6 }
 0x565   :  { %v337_v4 = vsub.f32 1.0, %v336_v3 }
 0x567   :  { %v338_v6 = vmul.f32 %v1368_v1, %v337_v4 }
 0x569   :  { %v339_v8 = vadd.f32 %v1368_v1, %v338_v6 }
 0x56b   :  { %v343_v11 = vsel %vm342_vm10, %v1368_v1, %v339_v8 }
 0x56c   :  { %v348_v14 = vsel %vm345_vm11, %v347_v12, %v343_v11 }
 0x56d   :  { %v351_v22 = vmul.f32 %v348_v14, %v1601_v24 }
 0x58c   :  { %v425_v59 = vpop.permute.xlu2 %424 }
 0x58d   :  { %v427_v61 = vmul.f32 %v425_v59, %v416_v60 }
 0x58f   :  { %429 = vrot.lane.b32.xlu1 %v427_v61, %s1464_s3 }
 0x5c1   :  { %v354_v13 = vpop.permute.xlu1 %353 }
 0x5c2   :  { %v356_v15 = vmul.f32 %v354_v13, %v348_v14 }
 0x5c4   :  { %358 = vrot.lane.b32.xlu0 %v356_v15, %s1464_s3 }
 0x601   :  { %v430_v18 = vpop.permute.xlu1 %429 }
 0x602   :  { %v1629_v19 = vadd.f32 %v430_v18, %v422_v17 }
 0x604   :  { %1369 = vtanh.f32 %v1629_v19  ;;  %v559_v12 = vrot.slane %v1629_v19, 4 }
 0x60a   :  { %v1370_v21 = vpop.eup %1369 }
 0x60b   :  { %435 = vrot.lane.b32.xlu0 %v1370_v21, %s1465_s14 }
 0x636   :  { %v359_v23 = vpop.permute.xlu0 %358 }
 0x637   :  { %v1634_v25 = vadd.f32 %v359_v23, %v351_v22 }
 0x639   :  { %1371 = vtanh.f32 %v1634_v25 }
 0x63f   :  { %v1372_v26 = vpop.eup %1371 }
 0x640   :  { %364 = vrot.lane.b32.xlu2 %v1372_v26, %s1465_s14 }
 0x67d   :  { %v436_v20 = vpop.permute.xlu0 %435 }
 0x67e   :  { %v438_v27 = vmul.f32 %v436_v20, %v416_v60 }
 0x680   :  { %440 = vrot.lane.b32.xlu1 %v438_v27, %s1466_s19 }
 0x69a   :  { %v365_v28 = vpop.permute.xlu2 %364 }
 0x69b   :  { %v1639_v29 = vmul.f32 %v365_v28, %v348_v14 }
 0x69d   :  { %443 = vrot.lane.b32.xlu2 %v1639_v29, %s1463_s13 }
 0x6f2   :  { %v441_v31 = vpop.permute.xlu1 %440 }
 0x6f3   :  { %1293 = vmatmul.msk.f32.vlgmr.msrb.gmra.mxu1 %vm91_vm7, %v441_v31 }
 0x6f4   :  { %1025 = vmatpush.msrb.mxu1 %v1567_v35 }
 0x6f7   :  { %v444_v24 = vpop.permute.xlu2 %443 }
 0x6f8   :  { %v446_v32 = vsel %vm91_vm7, %v441_v31, %v444_v24 }
 0x6f9   :  { %1290 = vmatmul.msk.f32.vlgmr.msra.gmra.mxu3 %vm165_vm8, %v446_v32 }
 0x6fa   :  { %886 = vmatpush.msra.mxu3 %v1567_v35 }
 0x770   :  { %v531_v33 = vpop.f32.mrf.mxu1 }
 0x771   :  { %v535_v34 = vrot.slane %v531_v33, 4 }
 0x773   :  { %v537_v36 = vadd.f32 %v535_v34, %v1620_v40  ;;  %v1678_v34 = vadd.f32 %v1543_v7, %v1584_v39 }
 0x775   :  { %1373 = vtanh.f32 %v537_v36  ;;  %v1294_v45 = vmul.f32 -1.442695, %v537_v36 }
 0x77b   :  { %v1374_v37 = vpop.eup %1373 }
 0x77c   :  { %563 = vrot.lane.b32.xlu0 %v1374_v37, %s1463_s13  ;;  %v467_v41 = vpop.f32.mrf.mxu3 }
 0x77d   :  { %v468_v42 = vadd.f32 %v1590_v43, %v467_v41 }
 0x77f   :  { %1375 = vtanh.f32 %v468_v42  ;;  %v1291_v47 = vmul.f32 -1.442695, %v468_v42 }
 0x780   :  { %1377 = vpow2.f32 %v1294_v45 }
 0x781   :  { %1379 = vpow2.f32 %v1291_v47 }
 0x785   :  { %v1376_v44 = vpop.eup %1375 }
 0x786   :  { %492 = vrot.lane.b32.xlu1 %v1376_v44, %s1463_s13  ;;  %v1378_v46 = vpop.eup %1377 }
 0x787   :  { %v541_v48 = vadd.f32 1.0, %v1378_v46  ;;  %v1380_v49 = vpop.eup %1379 }
 0x788   :  { %v473_v50 = vadd.f32 1.0, %v1380_v49 }
 0x789   :  { %1381 = vrcp.f32 %v541_v48  ;;  %v553_v56 = vand.u32 2147483648, %v541_v48  ;;  %vm547_vm13 = vweird.f32 %v541_v48  ;;  %v551_v57 = vand.u32 2147483647, %v541_v48 }
 0x78a   :  { %1383 = vrcp.f32 %v473_v50  ;;  %v485_v3 = vand.u32 2147483648, %v473_v50  ;;  %vm479_vm1 = vweird.f32 %v473_v50  ;;  %v483_v4 = vand.u32 2147483647, %v473_v50 }
 0x78b   :  { %v554_v60 = vor.u32 1.1754944e-38, %v553_v56  ;;  %vm552_vm15 = vcmp.eq.f32.partialorder %v551_v57, 8.507059e+37 }
 0x78c   :  { %v486_v8 = vor.u32 1.1754944e-38, %v485_v3  ;;  %vm484_vm4 = vcmp.eq.f32.partialorder %v483_v4, 8.507059e+37 }
 0x78f   :  { %v1382_v40 = vpop.eup %1381 }
 0x790   :  { %v543_v5 = vmul.f32 %v1382_v40, %v541_v48  ;;  %v1384_v52 = vpop.eup %1383  ;;  %vm548_vm12 = vweird.f32 %v1382_v40 }
 0x791   :  { %v475_v54 = vmul.f32 %v1384_v52, %v473_v50  ;;  %vm549_vm14 = vmor %vm547_vm13, %vm548_vm12  ;;  %vm480_vm0 = vweird.f32 %v1384_v52 }
 0x792   :  { %v544_v51 = vsub.f32 1.0, %v543_v5  ;;  %vm481_vm3 = vmor %vm479_vm1, %vm480_vm0 }
 0x793   :  { %v476_v58 = vsub.f32 1.0, %v475_v54 }
 0x794   :  { %v545_v53 = vmul.f32 %v1382_v40, %v544_v51 }
 0x795   :  { %v477_v61 = vmul.f32 %v1384_v52, %v476_v58 }
 0x796   :  { %v546_v55 = vadd.f32 %v1382_v40, %v545_v53 }
 0x797   :  { %v478_v1 = vadd.f32 %v1384_v52, %v477_v61 }
 0x798   :  { %v550_v59 = vsel %vm549_vm14, %v1382_v40, %v546_v55 }
 0x799   :  { %v555_v63 = vsel %vm552_vm15, %v554_v60, %v550_v59  ;;  %v482_v6 = vsel %vm481_vm3, %v1384_v52, %v478_v1 }
 0x79a   :  { %v487_v10 = vsel %vm484_vm4, %v486_v8, %v482_v6  ;;  %v561_v13 = vmul.f32 %v559_v12, %v555_v63 }
 0x79b   :  { %v490_v17 = vmul.f32 %v487_v10, %v1634_v25 }
 0x7ee   :  { %v564_v62 = vpop.permute.xlu0 %563 }
 0x7ef   :  { %v566_v0 = vmul.f32 %v564_v62, %v555_v63 }
 0x7f1   :  { %568 = vrot.lane.b32.xlu2 %v566_v0, %s1464_s3 }
 0x7f8   :  { %v493_v9 = vpop.permute.xlu1 %492 }
 0x7f9   :  { %v495_v11 = vmul.f32 %v493_v9, %v487_v10 }
 0x7fb   :  { %497 = vrot.lane.b32.xlu0 %v495_v11, %s1464_s3 }
 0x84b   :  { %v569_v14 = vpop.permute.xlu2 %568 }
 0x84c   :  { %v1655_v15 = vadd.f32 %v569_v14, %v561_v13 }
 0x84e   :  { %1385 = vtanh.f32 %v1655_v15 }
 0x854   :  { %v1386_v16 = vpop.eup %1385 }
 0x855   :  { %574 = vrot.lane.b32.xlu1 %v1386_v16, %s1465_s14 }
 0x86d   :  { %v498_v18 = vpop.permute.xlu0 %497 }
 0x86e   :  { %v1660_v21 = vadd.f32 %v498_v18, %v490_v17 }
 0x870   :  { %1387 = vtanh.f32 %v1660_v21 }
 0x876   :  { %v1388_v22 = vpop.eup %1387 }
 0x877   :  { %503 = vrot.lane.b32.xlu2 %v1388_v22, %s1465_s14 }
 0x8c7   :  { %v575_v19 = vpop.permute.xlu1 %574 }
 0x8c8   :  { %v577_v23 = vmul.f32 %v575_v19, %v555_v63 }
 0x8ca   :  { %v653_v26 = vrot.slane %v577_v23, 4  ;;  %579 = vrot.lane.b32.xlu1 %v577_v23, %s1466_s19 }
 0x8cc   :  { %654 = vrot.lane.b32.xlu0 %v653_v26, %s1466_s19 }
 0x8d1   :  { %v504_v20 = vpop.permute.xlu2 %503 }
 0x8d2   :  { %v1666_v27 = vmul.f32 %v504_v20, %v487_v10  ;;  %v700_v10 = vrot.slane %v1655_v15, 4 }
 0x8d4   :  { %v582_v25 = vrot.slane %v1666_v27, 4 }
 0x8d6   :  { %583 = vrot.lane.b32.xlu2 %v582_v25, %s1463_s13 }
 0x930   :  { %v584_v28 = vpop.permute.xlu2 %583 }
 0x93c   :  { %v580_v31 = vpop.permute.xlu1 %579 }
 0x93d   :  { %v586_v24 = vsel %vm91_vm7, %v580_v31, %v584_v28 }
 0x93e   :  { %v588_v32 = vrot.slane %v586_v24, 4  ;;  %v655_v33 = vpop.permute.xlu0 %654 }
 0x93f   :  { %1298 = vmatmul.msk.f32.vlgmr.msrb.gmra.mxu3 %vm91_vm7, %v655_v33 }
 0x940   :  { %1295 = vmatmul.msk.f32.vlgmr.msrb.gmra.mxu2 %vm165_vm8, %v588_v32  ;;  %1166 = vmatpush.msrb.mxu3 %v1567_v35 }
 0x941   :  { %1312 = vmatpush.msk.msrb.mxu2 %vm95_vm2, %v1521_v2 }
 0x9c2   :  { %v675_v36 = vpop.f32.mrf.mxu3 }
 0x9c3   :  { %v678_v37 = vadd.f32 %v675_v36, %v1678_v34  ;;  %v608_v41 = vpop.f32.mrf.mxu2 }
 0x9c4   :  { %v609_v42 = vadd.f32 %v1590_v43, %v608_v41 }
 0x9c5   :  { %1389 = vtanh.f32 %v678_v37  ;;  %v1299_v35 = vmul.f32 -1.442695, %v678_v37 }
 0x9c6   :  { %1391 = vtanh.f32 %v609_v42  ;;  %v1296_v2 = vmul.f32 -1.442695, %v609_v42 }
 0x9c7   :  { %1393 = vpow2.f32 %v1299_v35 }
 0x9c8   :  { %1395 = vpow2.f32 %v1296_v2 }
 0x9cb   :  { %v1390_v44 = vpop.eup %1389 }
 0x9cc   :  { %v1392_v45 = vpop.eup %1391  ;;  %704 = vrot.lane.b32.xlu0 %v1390_v44, %s1463_s13 }
 0x9cd   :  { %633 = vrot.lane.b32.xlu1 %v1392_v45, %s1463_s13  ;;  %v1394_v39 = vpop.eup %1393 }
 0x9ce   :  { %v1396_v46 = vpop.eup %1395  ;;  %v682_v47 = vadd.f32 1.0, %v1394_v39 }
 0x9cf   :  { %v614_v48 = vadd.f32 1.0, %v1396_v46 }
 0x9d0   :  { %1397 = vrcp.f32 %v682_v47  ;;  %v694_v56 = vand.u32 2147483648, %v682_v47  ;;  %vm688_vm9 = vweird.f32 %v682_v47  ;;  %v692_v58 = vand.u32 2147483647, %v682_v47 }
 0x9d1   :  { %1399 = vrcp.f32 %v614_v48  ;;  %v626_v59 = vand.u32 2147483648, %v614_v48  ;;  %vm620_vm11 = vweird.f32 %v614_v48  ;;  %v624_v60 = vand.u32 2147483647, %v614_v48 }
 0x9d2   :  { %v695_v62 = vor.u32 1.1754944e-38, %v694_v56  ;;  %vm693_vm13 = vcmp.eq.f32.partialorder %v692_v58, 8.507059e+37 }
 0x9d3   :  { %v627_v0 = vor.u32 1.1754944e-38, %v626_v59  ;;  %vm625_vm14 = vcmp.eq.f32.partialorder %v624_v60, 8.507059e+37 }
 0x9d6   :  { %v1398_v49 = vpop.eup %1397 }
 0x9d7   :  { %v1400_v40 = vpop.eup %1399  ;;  %v684_v50 = vmul.f32 %v1398_v49, %v682_v47  ;;  %vm689_vm5 = vweird.f32 %v1398_v49 }
 0x9d8   :  { %v616_v5 = vmul.f32 %v1400_v40, %v614_v48  ;;  %vm621_vm6 = vweird.f32 %v1400_v40  ;;  %vm690_vm10 = vmor %vm688_vm9, %vm689_vm5 }
 0x9d9   :  { %v685_v51 = vsub.f32 1.0, %v684_v50  ;;  %vm622_vm12 = vmor %vm620_vm11, %vm621_vm6 }
 0x9da   :  { %v617_v52 = vsub.f32 1.0, %v616_v5 }
 0x9db   :  { %v686_v53 = vmul.f32 %v1398_v49, %v685_v51 }
 0x9dc   :  { %v618_v54 = vmul.f32 %v1400_v40, %v617_v52 }
 0x9dd   :  { %v687_v55 = vadd.f32 %v1398_v49, %v686_v53 }
 0x9de   :  { %v619_v57 = vadd.f32 %v1400_v40, %v618_v54 }
 0x9df   :  { %v691_v61 = vsel %vm690_vm10, %v1398_v49, %v687_v55 }
 0x9e0   :  { %v623_v63 = vsel %vm622_vm12, %v1400_v40, %v619_v57  ;;  %v696_v3 = vsel %vm693_vm13, %v695_v62, %v691_v61 }
 0x9e1   :  { %v628_v8 = vsel %vm625_vm14, %v627_v0, %v623_v63  ;;  %v702_v11 = vmul.f32 %v700_v10, %v696_v3 }
 0x9e2   :  { %v631_v16 = vmul.f32 %v628_v8, %v1660_v21 }
 0xa3e   :  { %v705_v1 = vpop.permute.xlu0 %704 }
 0xa3f   :  { %v707_v4 = vmul.f32 %v705_v1, %v696_v3  ;;  %v634_v6 = vpop.permute.xlu1 %633 }
 0xa40   :  { %v636_v9 = vmul.f32 %v634_v6, %v628_v8 }
 0xa41   :  { %709 = vrot.lane.b32.xlu2 %v707_v4, %s1464_s3 }
 0xa42   :  { %638 = vrot.lane.b32.xlu0 %v636_v9, %s1464_s3 }
 0xa9b   :  { %v710_v12 = vpop.permute.xlu2 %709 }
 0xa9c   :  { %v1687_v13 = vadd.f32 %v710_v12, %v702_v11 }
 0xa9e   :  { %1401 = vtanh.f32 %v1687_v13 }
 0xaa4   :  { %v1402_v14 = vpop.eup %1401 }
 0xaa5   :  { %715 = vrot.lane.b32.xlu1 %v1402_v14, %s1465_s14 }
 0xab4   :  { %v639_v17 = vpop.permute.xlu0 %638 }
 0xab5   :  { %v1692_v18 = vadd.f32 %v639_v17, %v631_v16 }
 0xab7   :  { %1403 = vtanh.f32 %v1692_v18 }
 0xabd   :  { %v1404_v22 = vpop.eup %1403 }
 0xabe   :  { %644 = vrot.lane.b32.xlu2 %v1404_v22, %s1465_s14 }
 0xb17   :  { %v716_v15 = vpop.permute.xlu1 %715 }
 0xb18   :  { %v718_v19 = vmul.f32 %v716_v15, %v696_v3  ;;  %v645_v23 = vpop.permute.xlu2 %644 }
 0xb19   :  { %v1696_v26 = vmul.f32 %v645_v23, %v628_v8  ;;  %v839_v8 = vrot.slane %v1687_v13, 4 }
 0xb1a   :  { %720 = vrot.lane.b32.xlu0 %v718_v19, %s1466_s19 }
 0xb1b   :  { %723 = vrot.lane.b32.xlu1 %v1696_v26, %s1463_s13 }
 0xb8c   :  { %v721_v20 = vpop.permute.xlu0 %720 }
 0xb8d   :  { %1303 = vmatmul.msk.f32.vlgmr.msra.gmra.mxu2 %vm91_vm7, %v721_v20  ;;  %v724_v21 = vpop.permute.xlu1 %723 }
 0xb8e   :  { %v726_v25 = vsel %vm91_vm7, %v721_v20, %v724_v21 }
 0xb8f   :  { %1300 = vmatmul.msk.f32.vlgmr.msra.gmra.mxu1 %vm165_vm8, %v726_v25 }
 0xc0c   :  { %v747_v28 = vpop.f32.mrf.mxu1 }
 0xc0d   :  { %v748_v31 = vadd.f32 %v1590_v43, %v747_v28  ;;  %v1731_v28 = vadd.f32 %v1543_v7, %v1582_v38 }
 0xc0f   :  { %1405 = vtanh.f32 %v748_v31  ;;  %v1301_v41 = vmul.f32 -1.442695, %v748_v31 }
 0xc10   :  { %v811_v24 = vpop.f32.mrf.mxu2 }
 0xc11   :  { %v815_v32 = vrot.slane %v811_v24, 4 }
 0xc13   :  { %v817_v33 = vadd.f32 %v815_v32, %v1678_v34 }
 0xc15   :  { %v1406_v36 = vpop.eup %1405  ;;  %1407 = vtanh.f32 %v817_v33  ;;  %v1304_v2 = vmul.f32 -1.442695, %v817_v33 }
 0xc16   :  { %772 = vrot.lane.b32.xlu2 %v1406_v36, %s1463_s13  ;;  %1409 = vpow2.f32 %v1301_v41 }
 0xc1b   :  { %v1408_v37 = vpop.eup %1407 }
 0xc1c   :  { %843 = vrot.lane.b32.xlu0 %v1408_v37, %s1463_s13  ;;  %v1410_v42 = vpop.eup %1409 }
 0xc1d   :  { %v753_v44 = vadd.f32 1.0, %v1410_v42 }
 0xc1f   :  { %1411 = vrcp.f32 %v753_v44  ;;  %v765_v34 = vand.u32 2147483648, %v753_v44  ;;  %vm759_vm0 = vweird.f32 %v753_v44  ;;  %v763_v49 = vand.u32 2147483647, %v753_v44 }
 0xc20   :  { %1413 = vpow2.f32 %v1304_v2 }
 0xc21   :  { %v766_v5 = vor.u32 1.1754944e-38, %v765_v34  ;;  %vm764_vm3 = vcmp.eq.f32.partialorder %v763_v49, 8.507059e+37 }
 0xc25   :  { %v1412_v45 = vpop.eup %1411 }
 0xc26   :  { %v755_v35 = vmul.f32 %v1412_v45, %v753_v44  ;;  %vm760_vm15 = vweird.f32 %v1412_v45  ;;  %v1414_v48 = vpop.eup %1413 }
 0xc27   :  { %vm761_vm1 = vmor %vm759_vm0, %vm760_vm15  ;;  %v821_v50 = vadd.f32 1.0, %v1414_v48 }
 0xc28   :  { %v756_v39 = vsub.f32 1.0, %v755_v35 }
 0xc29   :  { %1415 = vrcp.f32 %v821_v50  ;;  %v833_v59 = vand.u32 2147483648, %v821_v50  ;;  %vm827_vm5 = vweird.f32 %v821_v50  ;;  %v831_v60 = vand.u32 2147483647, %v821_v50 }
 0xc2a   :  { %v757_v46 = vmul.f32 %v1412_v45, %v756_v39 }
 0xc2b   :  { %v834_v62 = vor.u32 1.1754944e-38, %v833_v59  ;;  %vm832_vm9 = vcmp.eq.f32.partialorder %v831_v60, 8.507059e+37 }
 0xc2c   :  { %v758_v47 = vadd.f32 %v1412_v45, %v757_v46 }
 0xc2e   :  { %v762_v40 = vsel %vm761_vm1, %v1412_v45, %v758_v47 }
 0xc2f   :  { %v767_v52 = vsel %vm764_vm3, %v766_v5, %v762_v40  ;;  %v1416_v54 = vpop.eup %1415 }
 0xc30   :  { %v823_v55 = vmul.f32 %v1416_v54, %v821_v50  ;;  %vm828_vm4 = vweird.f32 %v1416_v54  ;;  %v770_v3 = vmul.f32 %v767_v52, %v1692_v18 }
 0xc31   :  { %vm829_vm6 = vmor %vm827_vm5, %vm828_vm4 }
 0xc32   :  { %v824_v56 = vsub.f32 1.0, %v823_v55 }
 0xc34   :  { %v825_v57 = vmul.f32 %v1416_v54, %v824_v56 }
 0xc36   :  { %v826_v58 = vadd.f32 %v1416_v54, %v825_v57 }
 0xc38   :  { %v830_v61 = vsel %vm829_vm6, %v1416_v54, %v826_v58 }
 0xc39   :  { %v835_v0 = vsel %vm832_vm9, %v834_v62, %v830_v61 }
 0xc3a   :  { %v841_v9 = vmul.f32 %v839_v8, %v835_v0 }
 0xc70   :  { %v773_v51 = vpop.permute.xlu2 %772 }
 0xc71   :  { %v775_v53 = vmul.f32 %v773_v51, %v767_v52 }
 0xc73   :  { %777 = vrot.lane.b32.xlu1 %v775_v53, %s1464_s3 }
 0xc8e   :  { %v844_v63 = vpop.permute.xlu0 %843 }
 0xc8f   :  { %v846_v1 = vmul.f32 %v844_v63, %v835_v0 }
 0xc91   :  { %848 = vrot.lane.b32.xlu2 %v846_v1, %s1464_s3 }
 0xce5   :  { %v778_v4 = vpop.permute.xlu1 %777 }
 0xce6   :  { %v1711_v6 = vadd.f32 %v778_v4, %v770_v3 }
 0xce8   :  { %1417 = vtanh.f32 %v1711_v6 }
 0xceb   :  { %v849_v10 = vpop.permute.xlu2 %848 }
 0xcec   :  { %v1715_v11 = vadd.f32 %v849_v10, %v841_v9 }
 0xcee   :  { %v1418_v12 = vpop.eup %1417  ;;  %1419 = vtanh.f32 %v1715_v11 }
 0xcef   :  { %783 = vrot.lane.b32.xlu0 %v1418_v12, %s1465_s14 }
 0xcf4   :  { %v1420_v14 = vpop.eup %1419 }
 0xcf5   :  { %854 = vrot.lane.b32.xlu1 %v1420_v14, %s1465_s14 }
 0xd61   :  { %v784_v16 = vpop.permute.xlu0 %783 }
 0xd62   :  { %v1720_v17 = vmul.f32 %v784_v16, %v767_v52 }
 0xd64   :  { %v862_v18 = vrot.slane %v1720_v17, 4 }
 0xd66   :  { %863 = vrot.lane.b32.xlu0 %v862_v18, %s1463_s13 }
 0xd67   :  { %v855_v13 = vpop.permute.xlu1 %854 }
 0xd68   :  { %v857_v22 = vmul.f32 %v855_v13, %v835_v0  ;;  %v980_v0 = vrot.slane %v1715_v11, 4 }
 0xd6a   :  { %v933_v15 = vrot.slane %v857_v22, 4  ;;  %859 = vrot.lane.b32.xlu2 %v857_v22, %s1466_s19 }
 0xd6c   :  { %934 = vrot.lane.b32.xlu1 %v933_v15, %s1466_s19 }
 0xdc4   :  { %v860_v19 = vpop.permute.xlu2 %859 }
 0xdd8   :  { %v864_v23 = vpop.permute.xlu0 %863 }
 0xdd9   :  { %v866_v20 = vsel %vm91_vm7, %v860_v19, %v864_v23 }
 0xdda   :  { %v868_v21 = vrot.slane %v866_v20, 4 }
 0xddc   :  { %1305 = vmatmul.msk.f32.vlgmr.msra.gmra.mxu3 %vm165_vm8, %v868_v21 }
 0xdde   :  { %v935_v25 = vpop.permute.xlu1 %934 }
 0xddf   :  { %1308 = vmatmul.msk.f32.vlgmr.msrb.gmra.mxu0 %vm91_vm7, %v935_v25 }
 0xe5c   :  { %v955_v31 = vpop.f32.mrf.mxu0 }
 0xe5d   :  { %v958_v24 = vadd.f32 %v955_v31, %v1731_v28 }
 0xe5f   :  { %1421 = vtanh.f32 %v958_v24  ;;  %v888_v32 = vpop.f32.mrf.mxu3  ;;  %v1309_v41 = vmul.f32 -1.442695, %v958_v24 }
 0xe60   :  { %v889_v33 = vadd.f32 %v1590_v43, %v888_v32 }
 0xe62   :  { %1423 = vtanh.f32 %v889_v33  ;;  %v1306_v45 = vmul.f32 -1.442695, %v889_v33 }
 0xe63   :  { %1425 = vpow2.f32 %v1309_v41 }
 0xe65   :  { %v1422_v36 = vpop.eup %1421 }
 0xe66   :  { %984 = vrot.lane.b32.xlu2 %v1422_v36, %s1463_s13 }
 0xe68   :  { %v1424_v37 = vpop.eup %1423 }
 0xe69   :  { %913 = vrot.lane.b32.xlu0 %v1424_v37, %s1463_s13  ;;  %v1426_v42 = vpop.eup %1425 }
 0xe6a   :  { %v962_v44 = vadd.f32 1.0, %v1426_v42 }
 0xe6c   :  { %1427 = vrcp.f32 %v962_v44  ;;  %v974_v47 = vand.u32 2147483648, %v962_v44  ;;  %vm968_vm11 = vweird.f32 %v962_v44  ;;  %v972_v48 = vand.u32 2147483647, %v962_v44 }
 0xe6d   :  { %1429 = vpow2.f32 %v1306_v45 }
 0xe6e   :  { %v975_v40 = vor.u32 1.1754944e-38, %v974_v47  ;;  %vm973_vm13 = vcmp.eq.f32.partialorder %v972_v48, 8.507059e+37 }
 0xe72   :  { %v1428_v7 = vpop.eup %1427 }
 0xe73   :  { %v964_v38 = vmul.f32 %v1428_v7, %v962_v44  ;;  %v1430_v39 = vpop.eup %1429  ;;  %vm969_vm10 = vweird.f32 %v1428_v7 }
 0xe74   :  { %v894_v34 = vadd.f32 1.0, %v1430_v39  ;;  %vm970_vm12 = vmor %vm968_vm11, %vm969_vm10 }
 0xe75   :  { %v965_v35 = vsub.f32 1.0, %v964_v38 }
 0xe76   :  { %1431 = vrcp.f32 %v894_v34  ;;  %v906_v57 = vand.u32 2147483648, %v894_v34  ;;  %vm900_vm15 = vweird.f32 %v894_v34  ;;  %v904_v58 = vand.u32 2147483647, %v894_v34 }
 0xe77   :  { %v966_v2 = vmul.f32 %v1428_v7, %v965_v35 }
 0xe78   :  { %v907_v60 = vor.u32 1.1754944e-38, %v906_v57  ;;  %vm905_vm1 = vcmp.eq.f32.partialorder %v904_v58, 8.507059e+37 }
 0xe79   :  { %v967_v46 = vadd.f32 %v1428_v7, %v966_v2 }
 0xe7b   :  { %v971_v49 = vsel %vm970_vm12, %v1428_v7, %v967_v46 }
 0xe7c   :  { %v976_v5 = vsel %vm973_vm13, %v975_v40, %v971_v49  ;;  %v1432_v52 = vpop.eup %1431 }
 0xe7d   :  { %v896_v53 = vmul.f32 %v1432_v52, %v894_v34  ;;  %vm901_vm14 = vweird.f32 %v1432_v52  ;;  %v982_v1 = vmul.f32 %v980_v0, %v976_v5 }
 0xe7e   :  { %vm902_vm0 = vmor %vm900_vm15, %vm901_vm14 }
 0xe7f   :  { %v897_v54 = vsub.f32 1.0, %v896_v53 }
 0xe81   :  { %v898_v55 = vmul.f32 %v1432_v52, %v897_v54 }
 0xe83   :  { %v899_v56 = vadd.f32 %v1432_v52, %v898_v55 }
 0xe85   :  { %v903_v59 = vsel %vm902_vm0, %v1432_v52, %v899_v56  ;;  %vm230_vm0 = vcmask 27648  }
 0xe86   :  { %v908_v62 = vsel %vm905_vm1, %v907_v60, %v903_v59 }
 0xe87   :  { %v911_v8 = vmul.f32 %v908_v62, %v1711_v6 }
 0xec0   :  { %v985_v50 = vpop.permute.xlu2 %984 }
 0xec1   :  { %v987_v51 = vmul.f32 %v985_v50, %v976_v5 }
 0xec3   :  { %989 = vrot.lane.b32.xlu1 %v987_v51, %s1464_s3 }
 0xedb   :  { %v914_v61 = vpop.permute.xlu0 %913 }
 0xedc   :  { %v916_v63 = vmul.f32 %v914_v61, %v908_v62 }
 0xede   :  { %918 = vrot.lane.b32.xlu2 %v916_v63, %s1464_s3 }
 0xf35   :  { %v990_v3 = vpop.permute.xlu1 %989 }
 0xf36   :  { %v1740_v4 = vadd.f32 %v990_v3, %v982_v1 }
 0xf38   :  { %1433 = vtanh.f32 %v1740_v4  ;;  %v919_v9 = vpop.permute.xlu2 %918  ;;  %v1119_v58 = vrot.slane %v1740_v4, 4 }
 0xf39   :  { %v1744_v10 = vadd.f32 %v919_v9, %v911_v8 }
 0xf3b   :  { %1435 = vtanh.f32 %v1744_v10 }
 0xf3e   :  { %v1434_v12 = vpop.eup %1433 }
 0xf3f   :  { %995 = vrot.lane.b32.xlu0 %v1434_v12, %s1465_s14 }
 0xf41   :  { %v1436_v14 = vpop.eup %1435 }
 0xf42   :  { %924 = vrot.lane.b32.xlu1 %v1436_v14, %s1465_s14 }
 0xfb1   :  { %v996_v11 = vpop.permute.xlu0 %995 }
 0xfb2   :  { %v998_v16 = vmul.f32 %v996_v11, %v976_v5 }
 0xfb4   :  { %1000 = vrot.lane.b32.xlu2 %v998_v16, %s1466_s19  ;;  %v925_v18 = vpop.permute.xlu1 %924 }
 0xfb5   :  { %v1750_v13 = vmul.f32 %v925_v18, %v908_v62 }
 0xfb7   :  { %1003 = vrot.lane.b32.xlu0 %v1750_v13, %s1463_s13 }
0x100e   :  { %v1001_v6 = vpop.permute.xlu2 %1000 }
0x100f   :  { %1313 = vmatmul.msk.f32.vlgmr.msrb.gmra.mxu2 %vm91_vm7, %v1001_v6 }
0x1029   :  { %v1004_v22 = vpop.permute.xlu0 %1003 }
0x102a   :  { %v1006_v15 = vsel %vm91_vm7, %v1001_v6, %v1004_v22  ;;  %v1461_v22 = vld [vmem:[%s1827_s5] ss:$0 sm:$0xff] }
0x102b   :  { %1310 = vmatmul.msk.f32.vlgmr.msrb.gmra.mxu1 %vm165_vm8, %v1006_v15 }
0x1092   :  { %v1091_v19 = vpop.f32.mrf.mxu2 }
0x1093   :  { %v1095_v23 = vrot.slane %v1091_v19, 4 }
0x1095   :  { %v1097_v20 = vadd.f32 %v1095_v23, %v1731_v28 }
0x1097   :  { %1437 = vtanh.f32 %v1097_v20  ;;  %v1314_v32 = vmul.f32 -1.442695, %v1097_v20 }
0x109d   :  { %v1438_v21 = vpop.eup %1437 }
0x109e   :  { %1123 = vrot.lane.b32.xlu2 %v1438_v21, %s1463_s13 }
0x10a8   :  { %v1027_v25 = vpop.f32.mrf.mxu1 }
0x10a9   :  { %v1028_v31 = vadd.f32 %v1590_v43, %v1027_v25 }
0x10ab   :  { %1439 = vtanh.f32 %v1028_v31  ;;  %v1311_v35 = vmul.f32 -1.442695, %v1028_v31 }
0x10ac   :  { %1441 = vpow2.f32 %v1314_v32 }
0x10b1   :  { %v1440_v24 = vpop.eup %1439 }
0x10b2   :  { %1052 = vrot.lane.b32.xlu1 %v1440_v24, %s1463_s13  ;;  %v1442_v33 = vpop.eup %1441 }
0x10b3   :  { %v1101_v36 = vadd.f32 1.0, %v1442_v33 }
0x10b5   :  { %1443 = vrcp.f32 %v1101_v36  ;;  %v1113_v7 = vand.u32 2147483648, %v1101_v36  ;;  %vm1107_vm4 = vweird.f32 %v1101_v36  ;;  %v1111_v38 = vand.u32 2147483647, %v1101_v36 }
0x10b6   :  { %1445 = vpow2.f32 %v1311_v35 }
0x10b7   :  { %v1114_v45 = vor.u32 1.1754944e-38, %v1113_v7  ;;  %vm1112_vm6 = vcmp.eq.f32.partialorder %v1111_v38, 8.507059e+37 }
0x10bb   :  { %v1444_v37 = vpop.eup %1443 }
0x10bc   :  { %v1103_v41 = vmul.f32 %v1444_v37, %v1101_v36  ;;  %vm1108_vm3 = vweird.f32 %v1444_v37  ;;  %v1446_v47 = vpop.eup %1445 }
0x10bd   :  { %vm1109_vm5 = vmor %vm1107_vm4, %vm1108_vm3  ;;  %v1033_v34 = vadd.f32 1.0, %v1446_v47  ;;  %v13_v47 = vstv %s1829_s7 }
0x10be   :  { %v1104_v42 = vsub.f32 1.0, %v1103_v41  ;;  %14 = vst [vmem:[#allocation3] sm:$0x1] %v13_v47 }
0x10bf   :  { %1447 = vrcp.f32 %v1033_v34  ;;  %v1045_v51 = vand.u32 2147483648, %v1033_v34  ;;  %vm1039_vm10 = vweird.f32 %v1033_v34  ;;  %v1043_v52 = vand.u32 2147483647, %v1033_v34 }
0x10c0   :  { %v1105_v28 = vmul.f32 %v1444_v37, %v1104_v42 }
0x10c1   :  { %v1046_v54 = vor.u32 1.1754944e-38, %v1045_v51  ;;  %vm1044_vm12 = vcmp.eq.f32.partialorder %v1043_v52, 8.507059e+37 }
0x10c2   :  { %v1106_v44 = vadd.f32 %v1444_v37, %v1105_v28 }
0x10c4   :  { %v1110_v43 = vsel %vm1109_vm5, %v1444_v37, %v1106_v44 }
0x10c5   :  { %v1115_v39 = vsel %vm1112_vm6, %v1114_v45, %v1110_v43  ;;  %v1448_v48 = vpop.eup %1447  ;;  %v40_v43 = vld [vmem:[%s1828_s6] sm:$0xf] }
0x10c6   :  { %v1035_v49 = vmul.f32 %v1448_v48, %v1033_v34  ;;  %vm1040_vm9 = vweird.f32 %v1448_v48  ;;  %v1121_v59 = vmul.f32 %v1119_v58, %v1115_v39  ;;  %1317 = vmatpush.msk.msra.mxu0 %vm95_vm2, %v40_v43  ;;  %vm1264_vm2 = vcmask 7168  }
0x10c7   :  { %vm1041_vm11 = vmor %vm1039_vm10, %vm1040_vm9 }
0x10c8   :  { %v1036_v40 = vsub.f32 1.0, %v1035_v49 }
0x10ca   :  { %v1037_v50 = vmul.f32 %v1448_v48, %v1036_v40 }
0x10cc   :  { %v1038_v5 = vadd.f32 %v1448_v48, %v1037_v50 }
0x10ce   :  { %v1042_v53 = vsel %vm1041_vm11, %v1448_v48, %v1038_v5 }
0x10cf   :  { %v1047_v56 = vsel %vm1044_vm12, %v1046_v54, %v1042_v53 }
0x10d0   :  { %v1050_v63 = vmul.f32 %v1047_v56, %v1744_v10 }
0x10f8   :  { %v1124_v2 = vpop.permute.xlu2 %1123 }
0x10f9   :  { %v1126_v46 = vmul.f32 %v1124_v2, %v1115_v39 }
0x10fb   :  { %1128 = vrot.lane.b32.xlu1 %v1126_v46, %s1464_s3 }
0x1124   :  { %v1053_v55 = vpop.permute.xlu1 %1052 }
0x1125   :  { %v1055_v57 = vmul.f32 %v1053_v55, %v1047_v56 }
0x1127   :  { %1057 = vrot.lane.b32.xlu0 %v1055_v57, %s1464_s3 }
0x116d   :  { %v1129_v60 = vpop.permute.xlu1 %1128 }
0x116e   :  { %v1131_v61 = vadd.f32 %v1129_v60, %v1121_v59 }
0x1170   :  { %1449 = vtanh.f32 %v1131_v61 }
0x1176   :  { %v1450_v62 = vpop.eup %1449 }
0x1177   :  { %1134 = vrot.lane.b32.xlu0 %v1450_v62, %s1465_s14 }
0x1199   :  { %v1058_v0 = vpop.permute.xlu0 %1057 }
0x119a   :  { %v1060_v1 = vadd.f32 %v1058_v0, %v1050_v63 }
0x119c   :  { %1451 = vtanh.f32 %v1060_v1 }
0x11a2   :  { %v1452_v3 = vpop.eup %1451 }
0x11a3   :  { %1063 = vrot.lane.b32.xlu2 %v1452_v3, %s1465_s14 }
0x11e9   :  { %v1135_v8 = vpop.permute.xlu0 %1134 }
0x11ea   :  { %v1137_v9 = vmul.f32 %v1135_v8, %v1115_v39 }
0x11ec   :  { %1139 = vrot.lane.b32.xlu1 %v1137_v9, %s1466_s19 }
0x11fd   :  { %v1064_v4 = vpop.permute.xlu2 %1063 }
0x11fe   :  { %v1066_v12 = vmul.f32 %v1064_v4, %v1047_v56 }
0x1200   :  { %v1142_v14 = vrot.slane %v1066_v12, 4 }
0x1202   :  { %1143 = vrot.lane.b32.xlu2 %v1142_v14, %s1463_s13 }
0x125c   :  { %v1144_v11 = vpop.permute.xlu2 %1143 }
0x125e   :  { %v1140_v16 = vpop.permute.xlu1 %1139 }
0x125f   :  { %v1146_v18 = vsel %vm91_vm7, %v1140_v16, %v1144_v11 }
0x1260   :  { %v1148_v10 = vrot.slane %v1146_v18, 4 }
0x1262   :  { %1315 = vmatmul.msk.f32.vlgmr.msrb.gmra.mxu3 %vm165_vm8, %v1148_v10 }
0x12e5   :  { %v1168_v6 = vpop.f32.mrf.mxu3 }
0x12e6   :  { %v1169_v15 = vadd.f32 %v1461_v22, %v1168_v6 }
0x12e8   :  { %1453 = vtanh.f32 %v1169_v15  ;;  %v1316_v23 = vmul.f32 -1.442695, %v1169_v15 }
0x12ea   :  { %1455 = vpow2.f32 %v1316_v23 }
0x12ee   :  { %v1454_v19 = vpop.eup %1453 }
0x12ef   :  { %1193 = vrot.lane.b32.xlu0 %v1454_v19, %s1463_s13 }
0x12f0   :  { %v1456_v20 = vpop.eup %1455 }
0x12f1   :  { %v1174_v21 = vadd.f32 1.0, %v1456_v20 }
0x12f3   :  { %1457 = vrcp.f32 %v1174_v21  ;;  %v1186_v36 = vand.u32 2147483648, %v1174_v21  ;;  %vm1180_vm13 = vweird.f32 %v1174_v21  ;;  %v1184_v37 = vand.u32 2147483647, %v1174_v21 }
0x12f5   :  { %v1187_v41 = vor.u32 1.1754944e-38, %v1186_v36  ;;  %vm1185_vm15 = vcmp.eq.f32.partialorder %v1184_v37, 8.507059e+37 }
0x12f7   :  { %227 = vrot.lane.b32.xlu0 %v1608_v30, %s1466_s19 }
0x12f9   :  { %v1458_v25 = vpop.eup %1457 }
0x12fa   :  { %v1176_v31 = vmul.f32 %v1458_v25, %v1174_v21  ;;  %vm1181_vm8 = vweird.f32 %v1458_v25 }
0x12fb   :  { %vm1182_vm14 = vmor %vm1180_vm13, %vm1181_vm8 }
0x12fc   :  { %v1177_v24 = vsub.f32 1.0, %v1176_v31 }
0x12fe   :  { %v1178_v32 = vmul.f32 %v1458_v25, %v1177_v24 }
0x12ff   :  { %649 = vrot.lane.b32.xlu0 %v1696_v26, %s1466_s19 }
0x1300   :  { %v1179_v33 = vadd.f32 %v1458_v25, %v1178_v32 }
0x1302   :  { %v1183_v30 = vsel %vm1182_vm14, %v1458_v25, %v1179_v33 }
0x1303   :  { %v1188_v42 = vsel %vm1185_vm15, %v1187_v41, %v1183_v30 }
0x1304   :  { %v1191_v45 = vmul.f32 %v1188_v42, %v1060_v1 }
0x1307   :  { %1068 = vrot.lane.b32.xlu0 %v1066_v12, %s1466_s19 }
0x1361   :  { %v1194_v26 = vpop.permute.xlu0 %1193 }
0x1362   :  { %v1196_v28 = vmul.f32 %v1194_v26, %v1188_v42 }
0x1364   :  { %1198 = vrot.lane.b32.xlu1 %v1196_v28, %s1464_s3 }
0x1369   :  { %v228_v44 = vpop.permute.xlu0 %227 }
0x136a   :  { %231 = vst.msk [vmem:[#allocation2] sm:$0xf] %vm230_vm0, %v228_v44 }
0x136c   :  { %369 = vrot.lane.b32.xlu1 %v1639_v29, %s1466_s19 }
0x1371   :  { %v650_v7 = vpop.permute.xlu0 %649 }
0x1372   :  { %652 = vst.msk [vmem:[#allocation2 + $0xc] sm:$0xf] %vm230_vm0, %v650_v7 }
0x1374   :  { %788 = vrot.lane.b32.xlu1 %v1720_v17, %s1466_s19 }
0x1379   :  { %v1069_v38 = vpop.permute.xlu0 %1068 }
0x137a   :  { %1071 = vst.msk [vmem:[#allocation2 + $0x18] sm:$0xf] %vm230_vm0, %v1069_v38 }
0x13d6   :  { %v1199_v35 = vpop.permute.xlu1 %1198 }
0x13d7   :  { %v1201_v2 = vadd.f32 %v1199_v35, %v1191_v45 }
0x13d9   :  { %1459 = vtanh.f32 %v1201_v2 }
0x13de   :  { %v370_v29 = vpop.permute.xlu1 %369 }
0x13df   :  { %v1460_v39 = vpop.eup %1459  ;;  %372 = vst.msk [vmem:[#allocation2 + $0x4] sm:$0xf] %vm230_vm0, %v370_v29 }
0x13e0   :  { %1204 = vrot.lane.b32.xlu2 %v1460_v39, %s1465_s14 }
0x13e6   :  { %v789_v17 = vpop.permute.xlu1 %788  ;;  %v1213_v46 = vld [vmem:[#allocation2] sm:$0xff] }
0x13e7   :  { %791 = vst.msk [vmem:[#allocation2 + $0x10] sm:$0xf] %vm230_vm0, %v789_v17  ;;  %1318 = vmatmul.msk.f32.vlgmr.msra.gmra.mxu0 %vm91_vm7, %v1213_v46 }
0x13e8   :  { %508 = vrot.lane.b32.xlu2 %v1666_v27, %s1466_s19 }
0x13f0   :  { %929 = vrot.lane.b32.xlu2 %v1750_v13, %s1466_s19  ;;  %v1332_v13 = vld [vmem:[#allocation3] ss:$0 sm:$0xff] }
0x143a   :  { %v1205_v34 = vpop.permute.xlu2 %1204 }
0x143b   :  { %v1207_v48 = vmul.f32 %v1205_v34, %v1188_v42 }
0x143d   :  { %1209 = vrot.lane.b32.xlu1 %v1207_v48, %s1466_s19 }
0x1442   :  { %v509_v49 = vpop.permute.xlu2 %508 }
0x1443   :  { %511 = vst.msk [vmem:[#allocation2 + $0x8] sm:$0xf] %vm230_vm0, %v509_v49 }
0x144a   :  { %v930_v40 = vpop.permute.xlu2 %929  ;;  %v1214_v50 = vld [vmem:[#allocation2 + $0x8] sm:$0xff] }
0x144b   :  { %932 = vst.msk [vmem:[#allocation2 + $0x14] sm:$0xf] %vm230_vm0, %v930_v40  ;;  %1319 = vmatmul.msk.f32.gmra.mxu0 %vm91_vm7, %v1214_v50 }
0x1452   :  { %v1215_v27 = vld [vmem:[#allocation2 + $0x10] sm:$0xff] }
0x1453   :  { %1320 = vmatmul.msk.f32.gmra.mxu0 %vm91_vm7, %v1215_v27 }
0x1464   :  { %v1252_v5 = vpop.f32.mrf.mxu0 }
0x1465   :  { %v1253_v51 = vadd.f32 %v1332_v13, %v1252_v5 }
0x1467   :  { %1265 = vst.msk [vmem:[%s1830_s8] sm:$0xff] %vm1264_vm2, %v1253_v51 }
0x14af   :  { %v1210_v52 = vpop.permute.xlu1 %1209 }
0x14b0   :  { %1212 = vst.msk [vmem:[#allocation2 + $0x1c] sm:$0xf] %vm230_vm0, %v1210_v52 }
0x14b7   :  { %v1216_v53 = vld [vmem:[#allocation2 + $0x18] sm:$0xff] }
0x14b8   :  { %1321 = vmatmul.msk.f32.gmra.mxu0 %vm91_vm7, %v1216_v53 }
0x14c8   :  { %v1255_v54 = vpop.f32.mrf.mxu0 }
0x14c9   :  { %v1256_v55 = vadd.f32 %v1332_v13, %v1255_v54 }
0x14cb   :  { %1266 = vst.msk [vmem:[%s1830_s8 + $0x8] sm:$0xff] %vm1264_vm2, %v1256_v55 }
0x14d0   :  { %v1258_v56 = vpop.f32.mrf.mxu0 }
0x14d1   :  { %v1259_v57 = vadd.f32 %v1332_v13, %v1258_v56 }
0x14d3   :  { %1267 = vst.msk [vmem:[%s1830_s8 + $0x10] sm:$0xff] %vm1264_vm2, %v1259_v57 }
0x1535   :  { %v1261_v58 = vpop.f32.mrf.mxu0 }
0x1536   :  { %v1262_v59 = vadd.f32 %v1332_v13, %v1261_v58 }
0x1538   :  { %1268 = vst.msk [vmem:[%s1830_s8 + $0x18] sm:$0xff] %vm1264_vm2, %v1262_v59 }

</bundles_post_ra>
